<compile_context>
chip_gen: v7x
topology: tpu7x:2x2x1
jax: 0.10.0
libtpu: 0.0.40
codegen_flags: <defaults>
</compile_context>

<pallas_src>
import functools

import jax
import jax.numpy as jnp
from jax import lax
from jax.experimental import pallas as pl
from jax.experimental.pallas import tpu as pltpu


_LANE = 128       # lane width (last dim)
_SUBLANE = 8      # f32 sublane granularity


def _round_up(x, m):
    return ((x + m - 1) // m) * m


def _pad_axis(x, axis, target):
    pad = target - x.shape[axis]
    if pad == 0:
        return x
    widths = [(0, 0)] * x.ndim
    widths[axis] = (0, pad)
    return jnp.pad(x, widths)


def _physical_vmem_bytes():
    try:
        return int(pltpu.get_tpu_info().vmem_capacity_bytes)
    except Exception:
        return 64 * 1024 * 1024    # conservative fallback (v7x per-TC VMEM)


def _resident_spec(shape, single_buffer):
    """BlockSpec for a grid-invariant (weight/bias) operand kept VMEM-resident."""
    nd = len(shape)
    index_map = lambda *_: (0,) * nd
    if single_buffer:
        # Block never changes across grid steps -> single-buffer it so it does
        # not cost 2x VMEM (matters for large H against v7x's 64 MiB VMEM).
        return pl.BlockSpec(shape, index_map, pipeline_mode=pl.Buffered(1))
    return pl.BlockSpec(shape, index_map)


def _mlp_disc_kernel(z_ref, w_in_ref, b_in_ref, w_h_ref, b_h_ref,
                     w_out_ref, b_out_ref, out_ref, *,
                     n_layers, wgan, matmul_dtype):
    """One batch tile of the fused MLP discriminator forward.

    z_ref:     (TB, D_in_p)       input tile (f32; cast to matmul_dtype here)
    w_in_ref:  (D_in_p, H_p)      input layer weight (pre-transposed, matmul_dtype)
    b_in_ref:  (1, H_p)           input layer bias (f32)
    w_h_ref:   (L, H_p, H_p)      stacked hidden weights (matmul_dtype, resident)
    b_h_ref:   (L, 1, H_p)        stacked hidden biases (f32)
    w_out_ref: (1, H_p)           output layer weight as a lane row (matmul_dtype)
    b_out_ref: (1, 1)             output layer bias (f32)
    out_ref:   (1, TB)            lane-dense output row for this batch tile
    """
    z = z_ref[...].astype(matmul_dtype)

    # input layer + ReLU (dropout = identity in eval mode)
    h = jnp.dot(z, w_in_ref[...], preferred_element_type=jnp.float32)
    h = jnp.maximum(h + b_in_ref[...], 0.0)           # f32 bias/ReLU on the VPU

    # hidden layers (static unroll — n_layers is small & known at trace time)
    for i in range(n_layers):
        h = jnp.dot(h.astype(matmul_dtype), w_h_ref[i],
                    preferred_element_type=jnp.float32)
        h = jnp.maximum(h + b_h_ref[i], 0.0)

    # output layer (H -> 1) computed directly as a lane row:
    #   (1, H_p) contracted with (TB, H_p) along H_p  ->  (1, TB)
    # Padded lanes of w_out / h are zero so they contribute nothing.
    o = lax.dot_general(w_out_ref[...], h.astype(matmul_dtype),
                        dimension_numbers=(((1,), (1,)), ((), ())),
                        preferred_element_type=jnp.float32)
    o = o + b_out_ref[...]                            # (1,1) lane-broadcast bias
    if not wgan:
        o = jax.nn.sigmoid(o)

    out_ref[...] = o.astype(out_ref.dtype)            # unmasked lane-dense store


def init_params(key, x_dim, hidden_dim, layers, c_dim=0):
    """Deterministic parameter init (shapes match the PyTorch module, pre-transposed)."""
    d_in = x_dim + c_dim
    keys = jax.random.split(key, 6)
    scale = 0.1
    L = max(layers, 1)
    return {
        # stored already transposed: (in_features, out_features)
        "w_in":  scale * jax.random.normal(keys[0], (d_in, hidden_dim), jnp.float32),
        "b_in":  scale * jax.random.normal(keys[1], (1, hidden_dim), jnp.float32),
        "w_h":   scale * jax.random.normal(keys[2], (L, hidden_dim, hidden_dim), jnp.float32),
        "b_h":   scale * jax.random.normal(keys[3], (L, hidden_dim), jnp.float32),
        "w_out": scale * jax.random.normal(keys[4], (hidden_dim, 1), jnp.float32),
        "b_out": scale * jax.random.normal(keys[5], (1, 1), jnp.float32),
    }


@functools.partial(jax.jit,
                   static_argnames=("layers", "condition", "wgan", "block_b",
                                    "matmul_dtype", "single_buffer_weights",
                                    "core_parallel"))
def vgan_discriminator_forward(z, params, c=None, *, layers, condition=False,
                               wgan=False, block_b=None,
                               matmul_dtype=jnp.bfloat16,
                               single_buffer_weights=True,
                               core_parallel=False):
    """Forward pass matching VGAN_discriminator.forward (eval-mode dropout)."""
    if condition:
        assert c is not None
        z = jnp.concatenate([z, c], axis=1)

    B, d_in = z.shape
    H = params["w_in"].shape[1]
    L = params["w_h"].shape[0]

    # lane padding targets
    d_in_p = _round_up(d_in, _LANE)
    h_p = _round_up(H, _LANE)
    itemsize = jnp.dtype(matmul_dtype).itemsize

    # batch tile: multiple of 128 so the lane-row output store is unmasked.
    if block_b is None:
        cap = 2048 if h_p <= 512 else 512
        block_b = min(cap, _round_up(B, _LANE))
    tb = max(_LANE, _round_up(block_b, _LANE))

    # --- VMEM accounting (corrected) ---------------------------------------
    weight_bufs = 1 if single_buffer_weights else 2
    weight_bytes = weight_bufs * (
        itemsize * (d_in_p * h_p + L * h_p * h_p + h_p)     # w_in, w_h, w_out
        + 4 * (h_p + L * h_p + 1))                          # b_in, b_h, b_out (f32)

    def _act_bytes(t):
        return (2 * t * d_in_p * 4      # double-buffered z tile (f32)
                + 2 * t * 4             # double-buffered (1, t) output row (f32)
                + 4 * t * h_p * 4)      # live h / cast copy / matmul result (f32-equiv)

    physical = _physical_vmem_bytes()
    budget = int(0.6 * physical)
    while tb > _LANE and weight_bytes + _act_bytes(tb) > budget:
        tb -= _LANE                     # shrink in 128-row steps (stays lane-dense)

    b_p = _round_up(B, tb)
    nt = b_p // tb

    vmem_cap = min(100 * 1024 * 1024, int(0.8 * physical))
    vmem_limit = int(min(vmem_cap,
                         max(16 * 1024 * 1024,
                             weight_bytes + _act_bytes(tb) + 4 * 1024 * 1024)))

    # --- one-time zero padding (exact) + bf16 weight cast --------------------
    z_p = _pad_axis(_pad_axis(z, 1, d_in_p), 0, b_p)                       # f32
    w_in = _pad_axis(_pad_axis(params["w_in"], 0, d_in_p), 1, h_p).astype(matmul_dtype)
    b_in = _pad_axis(params["b_in"], 1, h_p)                               # (1, h_p) f32
    w_h = _pad_axis(_pad_axis(params["w_h"], 1, h_p), 2, h_p).astype(matmul_dtype)
    b_h = _pad_axis(params["b_h"], 1, h_p).reshape(L, 1, h_p)              # f32
    w_out = _pad_axis(params["w_out"].T, 1, h_p).astype(matmul_dtype)      # (1, h_p)
    b_out = params["b_out"]                                                # (1, 1) f32

    # advisory cost estimate for the XLA scheduler
    flops = int(2 * b_p * (d_in_p * h_p + layers * h_p * h_p + h_p))
    bytes_accessed = int(4 * z_p.size
                         + itemsize * (w_in.size + w_h.size + w_out.size)
                         + 4 * (b_in.size + b_h.size + b_out.size)
                         + 4 * b_p)
    cost = pl.CostEstimate(flops=flops,
                           transcendentals=0 if wgan else int(b_p),
                           bytes_accessed=bytes_accessed)

    dims_sem = (pltpu.CORE_PARALLEL,) if core_parallel else (pltpu.PARALLEL,)

    kernel = functools.partial(_mlp_disc_kernel, n_layers=layers, wgan=wgan,
                               matmul_dtype=matmul_dtype)

    out = pl.pallas_call(
        kernel,
        out_shape=jax.ShapeDtypeStruct((nt, 1, tb), jnp.float32),
        grid_spec=pltpu.PrefetchScalarGridSpec(
            num_scalar_prefetch=0,
            grid=(nt,),
            in_specs=[
                pl.BlockSpec((tb, d_in_p), lambda i: (i, 0)),   # batch-tiled z
                _resident_spec((d_in_p, h_p), single_buffer_weights),
                _resident_spec((1, h_p), single_buffer_weights),
                _resident_spec((L, h_p, h_p), single_buffer_weights),
                _resident_spec((L, 1, h_p), single_buffer_weights),
                _resident_spec((1, h_p), single_buffer_weights),
                _resident_spec((1, 1), single_buffer_weights),
            ],
            # squeezed leading dim -> kernel sees a (1, tb) lane row
            out_specs=pl.BlockSpec((None, 1, tb), lambda i: (i, 0, 0)),
        ),
        compiler_params=pltpu.CompilerParams(
            dimension_semantics=dims_sem,
            vmem_limit_bytes=vmem_limit),
        cost_estimate=cost,
    )(z_p, w_in, b_in, w_h, b_h, w_out, b_out)

    # (nt, 1, tb) -> (b_p, 1), drop batch padding
    return out.reshape(b_p, 1)[:B]


def _reference_forward(z, params, c=None, *, layers, condition=False, wgan=False):
    """Pure-JAX reference for correctness check."""
    if condition:
        z = jnp.concatenate([z, c], axis=1)
    h = jnp.maximum(z @ params["w_in"] + params["b_in"], 0.0)
    for i in range(layers):
        h = jnp.maximum(h @ params["w_h"][i] + params["b_h"][i][None, :], 0.0)
    o = h @ params["w_out"] + params["b_out"]
    return o if wgan else jax.nn.sigmoid(o)


if __name__ == "__main__":
    # Small shapes consistent with the module's MLP forward.
    B, X_DIM, C_DIM, HIDDEN, LAYERS = 8, 16, 8, 32, 2
    CONDITION, WGAN = True, False

    key = jax.random.PRNGKey(0)
    kz, kc, kp = jax.random.split(key, 3)
    z = jax.random.normal(kz, (B, X_DIM), jnp.float32)
    c = jax.random.normal(kc, (B, C_DIM), jnp.float32)
    params = init_params(kp, X_DIM, HIDDEN, LAYERS, c_dim=C_DIM)

    ref = _reference_forward(z, params, c,
                             layers=LAYERS, condition=CONDITION, wgan=WGAN)

    def run(mm_dtype, single_buffer):
        o = vgan_discriminator_forward(z, params, c, layers=LAYERS,
                                       condition=CONDITION, wgan=WGAN,
                                       matmul_dtype=mm_dtype,
                                       single_buffer_weights=single_buffer)
        return jax.block_until_ready(o)

    # f32 MXU path first (bit-exact vs the f32 reference).
    try:
        single = True
        out_f32 = run(jnp.float32, single)
    except Exception:
        # Fallback if this jax build rejects pl.Buffered(1) single-buffering.
        single = False
        out_f32 = run(jnp.float32, single)
    assert out_f32.shape == (B, 1)
    assert jnp.allclose(out_f32, ref, atol=1e-5, rtol=1e-5), "f32 mismatch vs reference"

    # default bf16-MXU path (f32 accumulation) with loosened tolerance.
    out_bf16 = run(jnp.bfloat16, single)
    assert out_bf16.shape == (B, 1)
    assert jnp.allclose(out_bf16, ref, atol=2e-2, rtol=2e-2), "bf16 mismatch vs reference"

    print("KERNEL_OK")
</pallas_src>

<mosaic_0001>
module attributes {stable_mosaic.version = 11 : i64} {
  func.func @_mlp_disc_kernel(%arg0: i32, %arg1: memref<128x128xf32, #tpu.memory_space<vmem>>, %arg2: memref<128x128xf32, #tpu.memory_space<vmem>>, %arg3: memref<1x128xf32, #tpu.memory_space<vmem>>, %arg4: memref<2x128x128xf32, #tpu.memory_space<vmem>>, %arg5: memref<2x1x128xf32, #tpu.memory_space<vmem>>, %arg6: memref<1x128xf32, #tpu.memory_space<vmem>>, %arg7: memref<1x1xf32, #tpu.memory_space<vmem>>, %arg8: memref<1x1x128xf32, #tpu.memory_space<vmem>>) attributes {dimension_semantics = [#tpu.dimension_semantics<parallel>], iteration_bounds = array<i64: 1>, scalar_prefetch = 0 : i64, scratch_operands = 0 : i64, tpu.core_type = #tpu.core_type<tc>, window_params = [{transform_indices = @transform_0, window_bounds = array<i64: 128, 128>}, {pipeline_mode = #tpu.pipeline_mode<synchronous>, transform_indices = @transform_1, window_bounds = array<i64: 128, 128>}, {pipeline_mode = #tpu.pipeline_mode<synchronous>, transform_indices = @transform_2, window_bounds = array<i64: 1, 128>}, {pipeline_mode = #tpu.pipeline_mode<synchronous>, transform_indices = @transform_3, window_bounds = array<i64: 2, 128, 128>}, {pipeline_mode = #tpu.pipeline_mode<synchronous>, transform_indices = @transform_4, window_bounds = array<i64: 2, 1, 128>}, {pipeline_mode = #tpu.pipeline_mode<synchronous>, transform_indices = @transform_5, window_bounds = array<i64: 1, 128>}, {pipeline_mode = #tpu.pipeline_mode<synchronous>, transform_indices = @transform_6, window_bounds = array<i64: 1, 1>}, {transform_indices = @transform_7, window_bounds = array<i64: 1, 1, 128>}]} {
    %c0 = arith.constant 0 : index
    %c0_0 = arith.constant 0 : index
    %0 = vector.load %arg1[%c0, %c0_0] : memref<128x128xf32, #tpu.memory_space<vmem>>, vector<128x128xf32>
    %c0_1 = arith.constant 0 : index
    %c0_2 = arith.constant 0 : index
    %1 = vector.load %arg2[%c0_1, %c0_2] : memref<128x128xf32, #tpu.memory_space<vmem>>, vector<128x128xf32>
    %cst = arith.constant dense<0.000000e+00> : vector<128x128xf32>
    %2 = tpu.matmul %0, %1, %cst {dimension_numbers = #tpu.dot_dimension_numbers<[1], [0], [0], [1], [0, 0, 1, 1], [], []>} : vector<128x128xf32>, vector<128x128xf32>, vector<128x128xf32> -> vector<128x128xf32>
    %c0_3 = arith.constant 0 : index
    %c0_4 = arith.constant 0 : index
    %3 = vector.load %arg3[%c0_3, %c0_4] : memref<1x128xf32, #tpu.memory_space<vmem>>, vector<1x128xf32>
    %4 = vector.broadcast %3 : vector<1x128xf32> to vector<128x128xf32>
    %5 = arith.addf %2, %4 : vector<128x128xf32>
    %cst_5 = arith.constant 0.000000e+00 : f32
    %6 = vector.broadcast %cst_5 : f32 to vector<128x128xf32>
    %7 = arith.maximumf %5, %6 : vector<128x128xf32>
    %c0_6 = arith.constant 0 : index
    %c0_7 = arith.constant 0 : index
    %c0_8 = arith.constant 0 : index
    %8 = vector.load %arg4[%c0_6, %c0_7, %c0_8] : memref<2x128x128xf32, #tpu.memory_space<vmem>>, vector<1x128x128xf32>
    %9 = vector.shape_cast %8 : vector<1x128x128xf32> to vector<128x128xf32>
    %cst_9 = arith.constant dense<0.000000e+00> : vector<128x128xf32>
    %10 = tpu.matmul %7, %9, %cst_9 {dimension_numbers = #tpu.dot_dimension_numbers<[1], [0], [0], [1], [0, 0, 1, 1], [], []>} : vector<128x128xf32>, vector<128x128xf32>, vector<128x128xf32> -> vector<128x128xf32>
    %c0_10 = arith.constant 0 : index
    %c0_11 = arith.constant 0 : index
    %c0_12 = arith.constant 0 : index
    %11 = vector.load %arg5[%c0_10, %c0_11, %c0_12] : memref<2x1x128xf32, #tpu.memory_space<vmem>>, vector<1x1x128xf32>
    %12 = vector.shape_cast %11 : vector<1x1x128xf32> to vector<1x128xf32>
    %13 = vector.broadcast %12 : vector<1x128xf32> to vector<128x128xf32>
    %14 = arith.addf %10, %13 : vector<128x128xf32>
    %cst_13 = arith.constant 0.000000e+00 : f32
    %15 = vector.broadcast %cst_13 : f32 to vector<128x128xf32>
    %16 = arith.maximumf %14, %15 : vector<128x128xf32>
    %c1 = arith.constant 1 : index
    %c0_14 = arith.constant 0 : index
    %c0_15 = arith.constant 0 : index
    %17 = vector.load %arg4[%c1, %c0_14, %c0_15] : memref<2x128x128xf32, #tpu.memory_space<vmem>>, vector<1x128x128xf32>
    %18 = vector.shape_cast %17 : vector<1x128x128xf32> to vector<128x128xf32>
    %cst_16 = arith.constant dense<0.000000e+00> : vector<128x128xf32>
    %19 = tpu.matmul %16, %18, %cst_16 {dimension_numbers = #tpu.dot_dimension_numbers<[1], [0], [0], [1], [0, 0, 1, 1], [], []>} : vector<128x128xf32>, vector<128x128xf32>, vector<128x128xf32> -> vector<128x128xf32>
    %c1_17 = arith.constant 1 : index
    %c0_18 = arith.constant 0 : index
    %c0_19 = arith.constant 0 : index
    %20 = vector.load %arg5[%c1_17, %c0_18, %c0_19] : memref<2x1x128xf32, #tpu.memory_space<vmem>>, vector<1x1x128xf32>
    %21 = vector.shape_cast %20 : vector<1x1x128xf32> to vector<1x128xf32>
    %22 = vector.broadcast %21 : vector<1x128xf32> to vector<128x128xf32>
    %23 = arith.addf %19, %22 : vector<128x128xf32>
    %cst_20 = arith.constant 0.000000e+00 : f32
    %24 = vector.broadcast %cst_20 : f32 to vector<128x128xf32>
    %25 = arith.maximumf %23, %24 : vector<128x128xf32>
    %c0_21 = arith.constant 0 : index
    %c0_22 = arith.constant 0 : index
    %26 = vector.load %arg6[%c0_21, %c0_22] : memref<1x128xf32, #tpu.memory_space<vmem>>, vector<1x128xf32>
    %cst_23 = arith.constant dense<0.000000e+00> : vector<1x128xf32>
    %27 = tpu.matmul %26, %25, %cst_23 {dimension_numbers = #tpu.dot_dimension_numbers<[1], [1], [0], [0], [0, 0, 1, 0], [], []>} : vector<1x128xf32>, vector<128x128xf32>, vector<1x128xf32> -> vector<1x128xf32>
    %c0_24 = arith.constant 0 : index
    %c0_25 = arith.constant 0 : index
    %28 = vector.load %arg7[%c0_24, %c0_25] : memref<1x1xf32, #tpu.memory_space<vmem>>, vector<1x1xf32>
    %29 = vector.broadcast %28 : vector<1x1xf32> to vector<1x128xf32>
    %30 = arith.addf %27, %29 : vector<1x128xf32>
    %31 = arith.negf %30 : vector<1x128xf32>
    %32 = math.exp %31 : vector<1x128xf32>
    %cst_26 = arith.constant 1.000000e+00 : f32
    %33 = vector.broadcast %cst_26 : f32 to vector<1x128xf32>
    %34 = arith.addf %33, %32 : vector<1x128xf32>
    %35 = arith.divf %33, %34 : vector<1x128xf32>
    %c0_27 = arith.constant 0 : index
    %c0_28 = arith.constant 0 : index
    %c0_29 = arith.constant 0 : index
    %36 = vector.load %arg8[%c0_27, %c0_28, %c0_29] : memref<1x1x128xf32, #tpu.memory_space<vmem>>, vector<1x1x128xf32>
    %37 = vector.shape_cast %36 : vector<1x1x128xf32> to vector<1x128xf32>
    %38 = vector.shape_cast %35 : vector<1x128xf32> to vector<1x1x128xf32>
    tpu.vector_store %arg8[%c0_27, %c0_28, %c0_29], %38 {strides = array<i32>} : memref<1x1x128xf32, #tpu.memory_space<vmem>>, vector<1x1x128xf32>,
    return
  }
  func.func @transform_0(%arg0: i32) -> (i32, i32) {
    %c0_i32 = arith.constant 0 : i32
    %c0_i32_0 = arith.constant 0 : i32
    return %arg0, %c0_i32 : i32, i32
  }
  func.func @transform_1(%arg0: i32) -> (i32, i32) {
    %c0_i32 = arith.constant 0 : i32
    %c0_i32_0 = arith.constant 0 : i32
    %c0_i32_1 = arith.constant 0 : i32
    return %c0_i32, %c0_i32_0 : i32, i32
  }
  func.func @transform_2(%arg0: i32) -> (i32, i32) {
    %c0_i32 = arith.constant 0 : i32
    %c0_i32_0 = arith.constant 0 : i32
    %c0_i32_1 = arith.constant 0 : i32
    return %c0_i32, %c0_i32_0 : i32, i32
  }
  func.func @transform_3(%arg0: i32) -> (i32, i32, i32) {
    %c0_i32 = arith.constant 0 : i32
    %c0_i32_0 = arith.constant 0 : i32
    %c0_i32_1 = arith.constant 0 : i32
    %c0_i32_2 = arith.constant 0 : i32
    return %c0_i32, %c0_i32_0, %c0_i32_1 : i32, i32, i32
  }
  func.func @transform_4(%arg0: i32) -> (i32, i32, i32) {
    %c0_i32 = arith.constant 0 : i32
    %c0_i32_0 = arith.constant 0 : i32
    %c0_i32_1 = arith.constant 0 : i32
    %c0_i32_2 = arith.constant 0 : i32
    return %c0_i32, %c0_i32_0, %c0_i32_1 : i32, i32, i32
  }
  func.func @transform_5(%arg0: i32) -> (i32, i32) {
    %c0_i32 = arith.constant 0 : i32
    %c0_i32_0 = arith.constant 0 : i32
    %c0_i32_1 = arith.constant 0 : i32
    return %c0_i32, %c0_i32_0 : i32, i32
  }
  func.func @transform_6(%arg0: i32) -> (i32, i32) {
    %c0_i32 = arith.constant 0 : i32
    %c0_i32_0 = arith.constant 0 : i32
    %c0_i32_1 = arith.constant 0 : i32
    return %c0_i32, %c0_i32_0 : i32, i32
  }
  func.func @transform_7(%arg0: i32) -> (i32, i32, i32) {
    %c0_i32 = arith.constant 0 : i32
    %c0_i32_0 = arith.constant 0 : i32
    %c0_i32_1 = arith.constant 0 : i32
    return %arg0, %c0_i32, %c0_i32_0 : i32, i32, i32
  }
}

module attributes {stable_mosaic.version = 11 : i64} {
  func.func @_mlp_disc_kernel(%arg0: i32, %arg1: memref<128x128xf32, #tpu.memory_space<vmem>>, %arg2: memref<128x128xf32, #tpu.memory_space<vmem>>, %arg3: memref<1x128xf32, #tpu.memory_space<vmem>>, %arg4: memref<2x128x128xf32, #tpu.memory_space<vmem>>, %arg5: memref<2x1x128xf32, #tpu.memory_space<vmem>>, %arg6: memref<1x128xf32, #tpu.memory_space<vmem>>, %arg7: memref<1x1xf32, #tpu.memory_space<vmem>>, %arg8: memref<1x1x128xf32, #tpu.memory_space<vmem>>) attributes {dimension_semantics = [#tpu.dimension_semantics<parallel>], iteration_bounds = array<i64: 1>, scalar_prefetch = 0 : i64, scratch_operands = 0 : i64, tpu.core_type = #tpu.core_type<tc>, window_params = [{transform_indices = @transform_0, window_bounds = array<i64: 128, 128>}, {pipeline_mode = #tpu.pipeline_mode<synchronous>, transform_indices = @transform_1, window_bounds = array<i64: 128, 128>}, {pipeline_mode = #tpu.pipeline_mode<synchronous>, transform_indices = @transform_2, window_bounds = array<i64: 1, 128>}, {pipeline_mode = #tpu.pipeline_mode<synchronous>, transform_indices = @transform_3, window_bounds = array<i64: 2, 128, 128>}, {pipeline_mode = #tpu.pipeline_mode<synchronous>, transform_indices = @transform_4, window_bounds = array<i64: 2, 1, 128>}, {pipeline_mode = #tpu.pipeline_mode<synchronous>, transform_indices = @transform_5, window_bounds = array<i64: 1, 128>}, {pipeline_mode = #tpu.pipeline_mode<synchronous>, transform_indices = @transform_6, window_bounds = array<i64: 1, 1>}, {transform_indices = @transform_7, window_bounds = array<i64: 1, 1, 128>}]} {
    %c0 = arith.constant 0 : index
    %c0_0 = arith.constant 0 : index
    %0 = vector.load %arg1[%c0, %c0_0] : memref<128x128xf32, #tpu.memory_space<vmem>>, vector<128x128xf32>
    %c0_1 = arith.constant 0 : index
    %c0_2 = arith.constant 0 : index
    %1 = vector.load %arg2[%c0_1, %c0_2] : memref<128x128xf32, #tpu.memory_space<vmem>>, vector<128x128xf32>
    %cst = arith.constant dense<0.000000e+00> : vector<128x128xf32>
    %2 = tpu.matmul %0, %1, %cst {dimension_numbers = #tpu.dot_dimension_numbers<[1], [0], [0], [1], [0, 0, 1, 1], [], []>} : vector<128x128xf32>, vector<128x128xf32>, vector<128x128xf32> -> vector<128x128xf32>
    %c0_3 = arith.constant 0 : index
    %c0_4 = arith.constant 0 : index
    %3 = vector.load %arg3[%c0_3, %c0_4] : memref<1x128xf32, #tpu.memory_space<vmem>>, vector<1x128xf32>
    %4 = vector.broadcast %3 : vector<1x128xf32> to vector<128x128xf32>
    %5 = arith.addf %2, %4 : vector<128x128xf32>
    %cst_5 = arith.constant 0.000000e+00 : f32
    %6 = vector.broadcast %cst_5 : f32 to vector<128x128xf32>
    %7 = arith.maximumf %5, %6 : vector<128x128xf32>
    %c0_6 = arith.constant 0 : index
    %c0_7 = arith.constant 0 : index
    %c0_8 = arith.constant 0 : index
    %8 = vector.load %arg4[%c0_6, %c0_7, %c0_8] : memref<2x128x128xf32, #tpu.memory_space<vmem>>, vector<1x128x128xf32>
    %9 = vector.shape_cast %8 : vector<1x128x128xf32> to vector<128x128xf32>
    %cst_9 = arith.constant dense<0.000000e+00> : vector<128x128xf32>
    %10 = tpu.matmul %7, %9, %cst_9 {dimension_numbers = #tpu.dot_dimension_numbers<[1], [0], [0], [1], [0, 0, 1, 1], [], []>} : vector<128x128xf32>, vector<128x128xf32>, vector<128x128xf32> -> vector<128x128xf32>
    %c0_10 = arith.constant 0 : index
    %c0_11 = arith.constant 0 : index
    %c0_12 = arith.constant 0 : index
    %11 = vector.load %arg5[%c0_10, %c0_11, %c0_12] : memref<2x1x128xf32, #tpu.memory_space<vmem>>, vector<1x1x128xf32>
    %12 = vector.shape_cast %11 : vector<1x1x128xf32> to vector<1x128xf32>
    %13 = vector.broadcast %12 : vector<1x128xf32> to vector<128x128xf32>
    %14 = arith.addf %10, %13 : vector<128x128xf32>
    %cst_13 = arith.constant 0.000000e+00 : f32
    %15 = vector.broadcast %cst_13 : f32 to vector<128x128xf32>
    %16 = arith.maximumf %14, %15 : vector<128x128xf32>
    %c1 = arith.constant 1 : index
    %c0_14 = arith.constant 0 : index
    %c0_15 = arith.constant 0 : index
    %17 = vector.load %arg4[%c1, %c0_14, %c0_15] : memref<2x128x128xf32, #tpu.memory_space<vmem>>, vector<1x128x128xf32>
    %18 = vector.shape_cast %17 : vector<1x128x128xf32> to vector<128x128xf32>
    %cst_16 = arith.constant dense<0.000000e+00> : vector<128x128xf32>
    %19 = tpu.matmul %16, %18, %cst_16 {dimension_numbers = #tpu.dot_dimension_numbers<[1], [0], [0], [1], [0, 0, 1, 1], [], []>} : vector<128x128xf32>, vector<128x128xf32>, vector<128x128xf32> -> vector<128x128xf32>
    %c1_17 = arith.constant 1 : index
    %c0_18 = arith.constant 0 : index
    %c0_19 = arith.constant 0 : index
    %20 = vector.load %arg5[%c1_17, %c0_18, %c0_19] : memref<2x1x128xf32, #tpu.memory_space<vmem>>, vector<1x1x128xf32>
    %21 = vector.shape_cast %20 : vector<1x1x128xf32> to vector<1x128xf32>
    %22 = vector.broadcast %21 : vector<1x128xf32> to vector<128x128xf32>
    %23 = arith.addf %19, %22 : vector<128x128xf32>
    %cst_20 = arith.constant 0.000000e+00 : f32
    %24 = vector.broadcast %cst_20 : f32 to vector<128x128xf32>
    %25 = arith.maximumf %23, %24 : vector<128x128xf32>
    %c0_21 = arith.constant 0 : index
    %c0_22 = arith.constant 0 : index
    %26 = vector.load %arg6[%c0_21, %c0_22] : memref<1x128xf32, #tpu.memory_space<vmem>>, vector<1x128xf32>
    %cst_23 = arith.constant dense<0.000000e+00> : vector<1x128xf32>
    %27 = tpu.matmul %26, %25, %cst_23 {dimension_numbers = #tpu.dot_dimension_numbers<[1], [1], [0], [0], [0, 0, 1, 0], [], []>} : vector<1x128xf32>, vector<128x128xf32>, vector<1x128xf32> -> vector<1x128xf32>
    %c0_24 = arith.constant 0 : index
    %c0_25 = arith.constant 0 : index
    %28 = vector.load %arg7[%c0_24, %c0_25] : memref<1x1xf32, #tpu.memory_space<vmem>>, vector<1x1xf32>
    %29 = vector.broadcast %28 : vector<1x1xf32> to vector<1x128xf32>
    %30 = arith.addf %27, %29 : vector<1x128xf32>
    %31 = arith.negf %30 : vector<1x128xf32>
    %32 = math.exp %31 : vector<1x128xf32>
    %cst_26 = arith.constant 1.000000e+00 : f32
    %33 = vector.broadcast %cst_26 : f32 to vector<1x128xf32>
    %34 = arith.addf %33, %32 : vector<1x128xf32>
    %35 = arith.divf %33, %34 : vector<1x128xf32>
    %c0_27 = arith.constant 0 : index
    %c0_28 = arith.constant 0 : index
    %c0_29 = arith.constant 0 : index
    %36 = vector.load %arg8[%c0_27, %c0_28, %c0_29] : memref<1x1x128xf32, #tpu.memory_space<vmem>>, vector<1x1x128xf32>
    %37 = vector.shape_cast %36 : vector<1x1x128xf32> to vector<1x128xf32>
    %38 = vector.shape_cast %35 : vector<1x128xf32> to vector<1x1x128xf32>
    tpu.vector_store %arg8[%c0_27, %c0_28, %c0_29], %38 {strides = array<i32>} : memref<1x1x128xf32, #tpu.memory_space<vmem>>, vector<1x1x128xf32>,
    return
  }
  func.func @transform_0(%arg0: i32) -> (i32, i32) {
    %c0_i32 = arith.constant 0 : i32
    %c0_i32_0 = arith.constant 0 : i32
    return %arg0, %c0_i32 : i32, i32
  }
  func.func @transform_1(%arg0: i32) -> (i32, i32) {
    %c0_i32 = arith.constant 0 : i32
    %c0_i32_0 = arith.constant 0 : i32
    %c0_i32_1 = arith.constant 0 : i32
    return %c0_i32, %c0_i32_0 : i32, i32
  }
  func.func @transform_2(%arg0: i32) -> (i32, i32) {
    %c0_i32 = arith.constant 0 : i32
    %c0_i32_0 = arith.constant 0 : i32
    %c0_i32_1 = arith.constant 0 : i32
    return %c0_i32, %c0_i32_0 : i32, i32
  }
  func.func @transform_3(%arg0: i32) -> (i32, i32, i32) {
    %c0_i32 = arith.constant 0 : i32
    %c0_i32_0 = arith.constant 0 : i32
    %c0_i32_1 = arith.constant 0 : i32
    %c0_i32_2 = arith.constant 0 : i32
    return %c0_i32, %c0_i32_0, %c0_i32_1 : i32, i32, i32
  }
  func.func @transform_4(%arg0: i32) -> (i32, i32, i32) {
    %c0_i32 = arith.constant 0 : i32
    %c0_i32_0 = arith.constant 0 : i32
    %c0_i32_1 = arith.constant 0 : i32
    %c0_i32_2 = arith.constant 0 : i32
    return %c0_i32, %c0_i32_0, %c0_i32_1 : i32, i32, i32
  }
  func.func @transform_5(%arg0: i32) -> (i32, i32) {
    %c0_i32 = arith.constant 0 : i32
    %c0_i32_0 = arith.constant 0 : i32
    %c0_i32_1 = arith.constant 0 : i32
    return %c0_i32, %c0_i32_0 : i32, i32
  }
  func.func @transform_6(%arg0: i32) -> (i32, i32) {
    %c0_i32 = arith.constant 0 : i32
    %c0_i32_0 = arith.constant 0 : i32
    %c0_i32_1 = arith.constant 0 : i32
    return %c0_i32, %c0_i32_0 : i32, i32
  }
  func.func @transform_7(%arg0: i32) -> (i32, i32, i32) {
    %c0_i32 = arith.constant 0 : i32
    %c0_i32_0 = arith.constant 0 : i32
    %c0_i32_1 = arith.constant 0 : i32
    return %arg0, %c0_i32, %c0_i32_0 : i32, i32, i32
  }
}

</mosaic_0001>

<bundles_post_ra>
// kernel: vgan_discriminator_forward.1
= control target key start
LH: loop header
LB: loop body
LE: loop exit
PB: predicated region body
PF: predicated region fallthrough
CT: control target
= control target key end

     0   :  { %vm1157_vm0 = vmmov 0   ;;  %s1418_s1 = inlined_call_operand.vmem [shape: f32[128,128], index: 1, kind: input, shape index: {}]   ;;  %s1419_s0 = inlined_call_operand.vmem [shape: f32[128,128], index: 0, kind: input, shape index: {}]   ;;  %s1420_s3 = inlined_call_operand.vmem [shape: f32[2,128,128], index: 3, kind: input, shape index: {}]   ;;  %s1421_s2 = inlined_call_operand.vmem [shape: f32[1,128], index: 2, kind: input, shape index: {}]   ;;  %s1422_s4 = inlined_call_operand.vmem [shape: f32[2,1,128], index: 4, kind: input, shape index: {}]   ;;  %s1423_s6 = inlined_call_operand.<no memory space> [shape: f32[1,1], index: 6, kind: input, shape index: {}]   ;;  %s1424_s5 = inlined_call_operand.vmem [shape: f32[1,128], index: 5, kind: input, shape index: {}]   ;;  %s1425_s7 = inlined_call_operand.vmem [shape: f32[1,1,128], index: 7, kind: output, shape index: {}]  }
   0x1   :  { %v44_v0 = vld [vmem:[%s1418_s1] sm:$0xff]  ;;  %v45_v1 = vld [vmem:[%s1418_s1 + $0x8] sm:$0xff]  ;;  %v46_v2 = vld [vmem:[%s1418_s1 + $0x10] sm:$0xff] }
   0x2   :  { %v1027_v3 = vpack.c.bf16 %v45_v1, %v44_v0  ;;  %v47_v4 = vld [vmem:[%s1418_s1 + $0x18] sm:$0xff]  ;;  %v48_v6 = vld [vmem:[%s1418_s1 + $0x20] sm:$0xff]  ;;  %v49_v7 = vld [vmem:[%s1418_s1 + $0x28] sm:$0xff] }
   0x3   :  { %v1031_v5 = vpack.c.bf16 %v47_v4, %v46_v2  ;;  %v1035_v8 = vpack.c.bf16 %v49_v7, %v48_v6  ;;  %v28_v9 = vld [vmem:[%s1419_s0] sm:$0xff]  ;;  %v50_v10 = vld [vmem:[%s1418_s1 + $0x30] sm:$0xff]  ;;  %v51_v11 = vld [vmem:[%s1418_s1 + $0x38] sm:$0xff] }
   0x4   :  { %1028 = vmatprep.subr.bf16.mxu0 %v1027_v3  ;;  %856 = vmatprep.mubr.f32.mxu0 %v28_v9  ;;  %v1039_v12 = vpack.c.bf16 %v51_v11, %v50_v10  ;;  %v52_v13 = vld [vmem:[%s1418_s1 + $0x40] sm:$0xff]  ;;  %v53_v14 = vld [vmem:[%s1418_s1 + $0x48] sm:$0xff]  ;;  %v230_v17 = vld [vmem:[%s1420_s3 + $0x10] sm:$0xff] }
   0x5   :  { %1030 = vmatpush3.bf16.msra.mxu0 %v1027_v3  ;;  %v228_v15 = vld [vmem:[%s1420_s3] sm:$0xff]  ;;  %v229_v16 = vld [vmem:[%s1420_s3 + $0x8] sm:$0xff]  ;;  %v231_v18 = vld [vmem:[%s1420_s3 + $0x18] sm:$0xff]  ;;  %v1043_v21 = vpack.c.bf16 %v53_v14, %v52_v13 }
   0x6   :  { %1032 = vmatprep.subr.bf16.mxu0 %v1031_v5  ;;  %v1059_v19 = vpack.c.bf16 %v229_v16, %v228_v15  ;;  %v1063_v20 = vpack.c.bf16 %v231_v18, %v230_v17  ;;  %v232_v22 = vld [vmem:[%s1420_s3 + $0x20] sm:$0xff]  ;;  %v233_v23 = vld [vmem:[%s1420_s3 + $0x28] sm:$0xff]  ;;  %v54_v24 = vld [vmem:[%s1418_s1 + $0x50] sm:$0xff] }
   0x7   :  { %v55_v25 = vld [vmem:[%s1418_s1 + $0x58] sm:$0xff]  ;;  %v1067_v26 = vpack.c.bf16 %v233_v23, %v232_v22  ;;  %v234_v28 = vld [vmem:[%s1420_s3 + $0x30] sm:$0xff]  ;;  %v56_v30 = vld [vmem:[%s1418_s1 + $0x60] sm:$0xff] }
   0x8   :  { %1060 = vmatprep.subr.bf16.mxu1 %v1059_v19  ;;  %v1047_v27 = vpack.c.bf16 %v55_v25, %v54_v24  ;;  %v235_v29 = vld [vmem:[%s1420_s3 + $0x38] sm:$0xff]  ;;  %v57_v31 = vld [vmem:[%s1418_s1 + $0x68] sm:$0xff]  ;;  %v236_v34 = vld [vmem:[%s1420_s3 + $0x40] sm:$0xff] }
   0x9   :  { %1034 = vmatpush3.bf16.msra.mxu0 %v1031_v5  ;;  %1062 = vmatpush3.bf16.msra.mxu1 %v1059_v19  ;;  %v1071_v32 = vpack.c.bf16 %v235_v29, %v234_v28  ;;  %v1051_v33 = vpack.c.bf16 %v57_v31, %v56_v30  ;;  %v237_v35 = vld [vmem:[%s1420_s3 + $0x48] sm:$0xff]  ;;  %v58_v36 = vld [vmem:[%s1418_s1 + $0x70] sm:$0xff]  ;;  %v59_v37 = vld [vmem:[%s1418_s1 + $0x78] sm:$0xff] }
   0xa   :  { %1036 = vmatprep.subr.bf16.mxu0 %v1035_v8  ;;  %1064 = vmatprep.subr.bf16.mxu1 %v1063_v20  ;;  %v1075_v38 = vpack.c.bf16 %v237_v35, %v236_v34  ;;  %v1055_v39 = vpack.c.bf16 %v59_v37, %v58_v36  ;;  %v238_v40 = vld [vmem:[%s1420_s3 + $0x50] sm:$0xff]  ;;  %v239_v41 = vld [vmem:[%s1420_s3 + $0x58] sm:$0xff]  ;;  %v240_v43 = vld [vmem:[%s1420_s3 + $0x60] sm:$0xff] }
   0xb   :  { %v1079_v42 = vpack.c.bf16 %v239_v41, %v238_v40  ;;  %v241_v44 = vld [vmem:[%s1420_s3 + $0x68] sm:$0xff]  ;;  %v30_v47 = vld [vmem:[%s1419_s0 + $0x10] sm:$0xff]  ;;  %v31_v48 = vld [vmem:[%s1419_s0 + $0x18] sm:$0xff] }
   0xc   :  { %v29_v45 = vld [vmem:[%s1419_s0 + $0x8] sm:$0xff]  ;;  %v1083_v46 = vpack.c.bf16 %v241_v44, %v240_v43  ;;  %v32_v49 = vld [vmem:[%s1419_s0 + $0x20] sm:$0xff]  ;;  %v34_v51 = vld [vmem:[%s1419_s0 + $0x30] sm:$0xff] }
   0xd   :  { %1038 = vmatpush3.bf16.msra.mxu0 %v1035_v8  ;;  %1066 = vmatpush3.bf16.msra.mxu1 %v1063_v20  ;;  %v33_v50 = vld [vmem:[%s1419_s0 + $0x28] sm:$0xff]  ;;  %v35_v52 = vld [vmem:[%s1419_s0 + $0x38] sm:$0xff]  ;;  %v36_v53 = vld [vmem:[%s1419_s0 + $0x40] sm:$0xff] }
   0xe   :  { %1040 = vmatprep.subr.bf16.mxu0 %v1039_v12  ;;  %1068 = vmatprep.subr.bf16.mxu1 %v1067_v26  ;;  %v37_v54 = vld [vmem:[%s1419_s0 + $0x48] sm:$0xff]  ;;  %v38_v55 = vld [vmem:[%s1419_s0 + $0x50] sm:$0xff]  ;;  %v39_v56 = vld [vmem:[%s1419_s0 + $0x58] sm:$0xff] }
   0xf   :  { %v40_v57 = vld [vmem:[%s1419_s0 + $0x60] sm:$0xff]  ;;  %v41_v58 = vld [vmem:[%s1419_s0 + $0x68] sm:$0xff]  ;;  %v42_v59 = vld [vmem:[%s1419_s0 + $0x70] sm:$0xff] }
  0x10   :  { %v43_v60 = vld [vmem:[%s1419_s0 + $0x78] sm:$0xff]  ;;  %v242_v61 = vld [vmem:[%s1420_s3 + $0x70] sm:$0xff]  ;;  %v692_v0 = vld [vmem:[%s1420_s3 + $0x80] sm:$0xff] }
  0x11   :  { %1042 = vmatpush3.bf16.msra.mxu0 %v1039_v12  ;;  %1070 = vmatpush3.bf16.msra.mxu1 %v1067_v26  ;;  %v243_v62 = vld [vmem:[%s1420_s3 + $0x78] sm:$0xff]  ;;  %v693_v1 = vld [vmem:[%s1420_s3 + $0x88] sm:$0xff]  ;;  %v694_v2 = vld [vmem:[%s1420_s3 + $0x90] sm:$0xff] }
  0x12   :  { %1044 = vmatprep.subr.bf16.mxu0 %v1043_v21  ;;  %1072 = vmatprep.subr.bf16.mxu1 %v1071_v32  ;;  %v1087_v63 = vpack.c.bf16 %v243_v62, %v242_v61  ;;  %v1091_v3 = vpack.c.bf16 %v693_v1, %v692_v0  ;;  %v695_v4 = vld [vmem:[%s1420_s3 + $0x98] sm:$0xff]  ;;  %v696_v6 = vld [vmem:[%s1420_s3 + $0xa0] sm:$0xff]  ;;  %v697_v7 = vld [vmem:[%s1420_s3 + $0xa8] sm:$0xff] }
  0x13   :  { %v1095_v5 = vpack.c.bf16 %v695_v4, %v694_v2  ;;  %v1099_v8 = vpack.c.bf16 %v697_v7, %v696_v6  ;;  %v698_v9 = vld [vmem:[%s1420_s3 + $0xb0] sm:$0xff]  ;;  %v699_v10 = vld [vmem:[%s1420_s3 + $0xb8] sm:$0xff]  ;;  %v700_v12 = vld [vmem:[%s1420_s3 + $0xc0] sm:$0xff] }
  0x14   :  { %v1103_v11 = vpack.c.bf16 %v699_v10, %v698_v9  ;;  %v701_v13 = vld [vmem:[%s1420_s3 + $0xc8] sm:$0xff]  ;;  %v702_v15 = vld [vmem:[%s1420_s3 + $0xd0] sm:$0xff]  ;;  %v703_v16 = vld [vmem:[%s1420_s3 + $0xd8] sm:$0xff] }
  0x15   :  { %1046 = vmatpush3.bf16.msra.mxu0 %v1043_v21  ;;  %1074 = vmatpush3.bf16.msra.mxu1 %v1071_v32  ;;  %v1107_v14 = vpack.c.bf16 %v701_v13, %v700_v12  ;;  %v1111_v17 = vpack.c.bf16 %v703_v16, %v702_v15  ;;  %v704_v18 = vld [vmem:[%s1420_s3 + $0xe0] sm:$0xff]  ;;  %v705_v19 = vld [vmem:[%s1420_s3 + $0xe8] sm:$0xff]  ;;  %v706_v6 = vld [vmem:[%s1420_s3 + $0xf0] sm:$0xff] }
  0x16   :  { %1048 = vmatprep.subr.bf16.mxu0 %v1047_v27  ;;  %1076 = vmatprep.subr.bf16.mxu1 %v1075_v38  ;;  %v1115_v20 = vpack.c.bf16 %v705_v19, %v704_v18  ;;  %v690_v21 = vld [vmem:[%s1421_s2] ss:$0 sm:$0xff]  ;;  %v707_v7 = vld [vmem:[%s1420_s3 + $0xf8] sm:$0xff] }
  0x17   :  { %v691_v9 = vld [vmem:[%s1422_s4] ss:$0 sm:$0xff] }
  0x19   :  { %1050 = vmatpush3.bf16.msra.mxu0 %v1047_v27  ;;  %1078 = vmatpush3.bf16.msra.mxu1 %v1075_v38 }
  0x1a   :  { %1052 = vmatprep.subr.bf16.mxu0 %v1051_v33  ;;  %1080 = vmatprep.subr.bf16.mxu1 %v1079_v42 }
  0x1d   :  { %1054 = vmatpush3.bf16.msra.mxu0 %v1051_v33  ;;  %1082 = vmatpush3.bf16.msra.mxu1 %v1079_v42 }
  0x1e   :  { %1056 = vmatprep.subr.bf16.mxu0 %v1055_v39  ;;  %1084 = vmatprep.subr.bf16.mxu1 %v1083_v46 }
  0x21   :  { %1058 = vmatpush3.bf16.msra.mxu0 %v1055_v39  ;;  %1086 = vmatpush3.bf16.msra.mxu1 %v1083_v46 }
  0x22   :  { %1088 = vmatprep.subr.bf16.mxu1 %v1087_v63  ;;  %1092 = vmatprep.subr.bf16.mxu0 %v1091_v3 }
  0x24   :  { %857 = vmatmul.mubr.f32.vlgmr.msra.gmra.mrb[0].mxu0 %v29_v45 }
  0x25   :  { %859 = vmatprep.mubr.f32.mxu0 %v30_v47  ;;  %1090 = vmatpush3.bf16.msra.mxu1 %v1087_v63 }
  0x26   :  { %1094 = vmatpush3.bf16.msra.mxu0 %v1091_v3 }
  0x27   :  { %1096 = vmatprep.subr.bf16.mxu0 %v1095_v5 }
  0x28   :  { %860 = vmatmul.mubr.f32.gmra.mrb[2].mxu0 %v31_v48 }
  0x29   :  { %862 = vmatprep.mubr.f32.mxu0 %v32_v49 }
  0x2a   :  { %1098 = vmatpush3.bf16.msra.mxu0 %v1095_v5 }
  0x2b   :  { %1100 = vmatprep.subr.bf16.mxu0 %v1099_v8 }
  0x2c   :  { %863 = vmatmul.mubr.f32.gmra.mrb[4].mxu0 %v33_v50 }
  0x2d   :  { %865 = vmatprep.mubr.f32.mxu0 %v34_v51 }
  0x2e   :  { %1102 = vmatpush3.bf16.msra.mxu0 %v1099_v8  ;;  %v1119_v8 = vpack.c.bf16 %v707_v7, %v706_v6 }
  0x2f   :  { %1104 = vmatprep.subr.bf16.mxu0 %v1103_v11 }
  0x30   :  { %866 = vmatmul.mubr.f32.gmra.mrb[6].mxu0 %v35_v52 }
  0x31   :  { %868 = vmatprep.mubr.f32.mxu0 %v36_v53 }
  0x32   :  { %1106 = vmatpush3.bf16.msra.mxu0 %v1103_v11 }
  0x33   :  { %1108 = vmatprep.subr.bf16.mxu0 %v1107_v14 }
  0x34   :  { %869 = vmatmul.mubr.f32.gmra.mrb[8].mxu0 %v37_v54 }
  0x35   :  { %871 = vmatprep.mubr.f32.mxu0 %v38_v55 }
  0x36   :  { %1110 = vmatpush3.bf16.msra.mxu0 %v1107_v14 }
  0x37   :  { %1112 = vmatprep.subr.bf16.mxu0 %v1111_v17 }
  0x38   :  { %872 = vmatmul.mubr.f32.gmra.mrb[10].mxu0 %v39_v56 }
  0x39   :  { %874 = vmatprep.mubr.f32.mxu0 %v40_v57 }
  0x3a   :  { %1114 = vmatpush3.bf16.msra.mxu0 %v1111_v17 }
  0x3b   :  { %1116 = vmatprep.subr.bf16.mxu0 %v1115_v20 }
  0x3c   :  { %875 = vmatmul.mubr.f32.gmra.mrb[12].mxu0 %v41_v58 }
  0x3d   :  { %877 = vmatprep.mubr.f32.mxu0 %v42_v59 }
  0x3e   :  { %1118 = vmatpush3.bf16.msra.mxu0 %v1115_v20 }
  0x3f   :  { %1120 = vmatprep.subr.bf16.mxu0 %v1119_v8 }
  0x40   :  { %878 = vmatmul.mubr.f32.gmra.mrb[14].mxu0 %v43_v60 }
  0x42   :  { %1122 = vmatpush3.bf16.msra.mxu0 %v1119_v8 }
  0xf7   :  { %v858_v22 = vpop.f32.mrb[0].mxu0 }
  0xf8   :  { %v139_v23 = vadd.f32 %v858_v22, %v690_v21  ;;  %v133_v24 = vpop.f32.mrb[1].mxu0 }
  0xf9   :  { %v134_v25 = vadd.f32 %v690_v21, %v133_v24 }
  0xfa   :  { %v213_v28 = vmax.f32 %v139_v23, 0.0 }
  0xfb   :  { %v861_v26 = vpop.f32.mrb[2].mxu0  ;;  %v212_v27 = vmax.f32 %v134_v25, 0.0 }
  0xfc   :  { %v149_v29 = vadd.f32 %v861_v26, %v690_v21  ;;  %v143_v30 = vpop.f32.mrb[3].mxu0 }
  0xfd   :  { %v144_v31 = vadd.f32 %v690_v21, %v143_v30  ;;  %912 = vmatprep.mubr.f32.mxu1 %v212_v27 }
  0xfe   :  { %v215_v32 = vmax.f32 %v149_v29, 0.0  ;;  %913 = vmatmul.mubr.f32.vlgmr.msra.gmra.mrb[0].mxu1 %v213_v28 }
  0xff   :  { %v214_v33 = vmax.f32 %v144_v31, 0.0  ;;  %v864_v34 = vpop.f32.mrb[4].mxu0 }
 0x100   :  { %v159_v35 = vadd.f32 %v864_v34, %v690_v21  ;;  %v153_v36 = vpop.f32.mrb[5].mxu0 }
 0x101   :  { %915 = vmatprep.mubr.f32.mxu1 %v214_v33  ;;  %v154_v37 = vadd.f32 %v690_v21, %v153_v36 }
 0x102   :  { %v217_v38 = vmax.f32 %v159_v35, 0.0  ;;  %916 = vmatmul.mubr.f32.gmra.mrb[2].mxu1 %v215_v32 }
 0x103   :  { %v216_v39 = vmax.f32 %v154_v37, 0.0  ;;  %v867_v40 = vpop.f32.mrb[6].mxu0 }
 0x104   :  { %v169_v41 = vadd.f32 %v867_v40, %v690_v21  ;;  %v163_v42 = vpop.f32.mrb[7].mxu0 }
 0x105   :  { %918 = vmatprep.mubr.f32.mxu1 %v216_v39  ;;  %v164_v43 = vadd.f32 %v690_v21, %v163_v42 }
 0x106   :  { %919 = vmatmul.mubr.f32.gmra.mrb[4].mxu1 %v217_v38  ;;  %v219_v44 = vmax.f32 %v169_v41, 0.0 }
 0x107   :  { %v218_v45 = vmax.f32 %v164_v43, 0.0  ;;  %v870_v46 = vpop.f32.mrb[8].mxu0 }
 0x108   :  { %v179_v47 = vadd.f32 %v870_v46, %v690_v21  ;;  %v173_v48 = vpop.f32.mrb[9].mxu0 }
 0x109   :  { %921 = vmatprep.mubr.f32.mxu1 %v218_v45  ;;  %v174_v49 = vadd.f32 %v690_v21, %v173_v48 }
 0x10a   :  { %922 = vmatmul.mubr.f32.gmra.mrb[6].mxu1 %v219_v44  ;;  %v221_v50 = vmax.f32 %v179_v47, 0.0 }
 0x10b   :  { %v220_v51 = vmax.f32 %v174_v49, 0.0  ;;  %v873_v52 = vpop.f32.mrb[10].mxu0 }
 0x10c   :  { %v189_v53 = vadd.f32 %v873_v52, %v690_v21  ;;  %v183_v54 = vpop.f32.mrb[11].mxu0 }
 0x10d   :  { %924 = vmatprep.mubr.f32.mxu1 %v220_v51  ;;  %v184_v55 = vadd.f32 %v690_v21, %v183_v54 }
 0x10e   :  { %925 = vmatmul.mubr.f32.gmra.mrb[8].mxu1 %v221_v50  ;;  %v223_v56 = vmax.f32 %v189_v53, 0.0 }
 0x10f   :  { %v222_v57 = vmax.f32 %v184_v55, 0.0  ;;  %v876_v58 = vpop.f32.mrb[12].mxu0 }
 0x110   :  { %v199_v59 = vadd.f32 %v876_v58, %v690_v21  ;;  %v193_v60 = vpop.f32.mrb[13].mxu0  ;;  %v1156_v58 = vmov 0.0|0.0  }
 0x111   :  { %927 = vmatprep.mubr.f32.mxu1 %v222_v57  ;;  %v194_v61 = vadd.f32 %v690_v21, %v193_v60  ;;  %1123 = vmatprep.subr.bf16.mxu1 %v1156_v58  ;;  %v1159_v60 = vmov 0  }
 0x112   :  { %928 = vmatmul.mubr.f32.gmra.mrb[10].mxu1 %v223_v56  ;;  %v225_v62 = vmax.f32 %v199_v59, 0.0  ;;  %v1158_v59 = vmov 0.0   ;;  %1151 = vset.pattern.permute.xlu0 %v1159_v60 }
 0x113   :  { %v224_v63 = vmax.f32 %v194_v61, 0.0  ;;  %v879_v0 = vpop.f32.mrb[14].mxu0  ;;  %v12_v61 = vstv %s1423_s6 }
 0x114   :  { %v209_v1 = vadd.f32 %v879_v0, %v690_v21  ;;  %v203_v2 = vpop.f32.mrb[15].mxu0  ;;  %13 = vst [vmem:[#allocation2] sm:$0x1] %v12_v61 }
 0x115   :  { %930 = vmatprep.mubr.f32.mxu1 %v224_v63  ;;  %v204_v3 = vadd.f32 %v690_v21, %v203_v2  ;;  %v709_v63 = vld [vmem:[%s1422_s4 + $0x1] ss:$0 sm:$0xff] }
 0x116   :  { %931 = vmatmul.mubr.f32.gmra.mrb[12].mxu1 %v225_v62  ;;  %v227_v4 = vmax.f32 %v209_v1, 0.0 }
 0x117   :  { %v226_v5 = vmax.f32 %v204_v3, 0.0 }
 0x119   :  { %933 = vmatprep.mubr.f32.mxu1 %v226_v5 }
 0x11a   :  { %934 = vmatmul.mubr.f32.gmra.mrb[14].mxu1 %v227_v4 }
 0x11b   :  { %1024 = vmatprep.mubr.msk.f32.mxu1 %vm1157_vm0, %v1158_v59  ;;  %v599_v62 = vld [vmem:[#allocation2] sm:$0x1] }
 0x11c   :  { %602 = vperm.xlu0 %1151, %v599_v62  }
 0x19b   :  { %v603_v61 = vpop.permute.xlu0 %602 }
 0x1d1   :  { %v914_v10 = vpop.f32.mrb[0].mxu1 }
 0x1d2   :  { %v323_v11 = vadd.f32 %v914_v10, %v691_v9  ;;  %v317_v12 = vpop.f32.mrb[1].mxu1 }
 0x1d3   :  { %v318_v13 = vadd.f32 %v691_v9, %v317_v12 }
 0x1d4   :  { %v397_v16 = vmax.f32 %v323_v11, 0.0 }
 0x1d5   :  { %v396_v14 = vmax.f32 %v318_v13, 0.0  ;;  %v917_v15 = vpop.f32.mrb[2].mxu1 }
 0x1d6   :  { %v333_v17 = vadd.f32 %v917_v15, %v691_v9  ;;  %v327_v18 = vpop.f32.mrb[3].mxu1 }
 0x1d7   :  { %v328_v19 = vadd.f32 %v691_v9, %v327_v18  ;;  %968 = vmatprep.mubr.f32.mxu0 %v396_v14 }
 0x1d8   :  { %v399_v20 = vmax.f32 %v333_v17, 0.0  ;;  %969 = vmatmul.mubr.f32.vlgmr.msra.gmra.mrb[16].mxu0 %v397_v16 }
 0x1d9   :  { %v398_v21 = vmax.f32 %v328_v19, 0.0  ;;  %v920_v22 = vpop.f32.mrb[4].mxu1 }
 0x1da   :  { %v343_v23 = vadd.f32 %v920_v22, %v691_v9  ;;  %v337_v24 = vpop.f32.mrb[5].mxu1 }
 0x1db   :  { %971 = vmatprep.mubr.f32.mxu0 %v398_v21  ;;  %v338_v25 = vadd.f32 %v691_v9, %v337_v24 }
 0x1dc   :  { %v401_v26 = vmax.f32 %v343_v23, 0.0  ;;  %972 = vmatmul.mubr.f32.gmra.mrb[18].mxu0 %v399_v20 }
 0x1dd   :  { %v400_v27 = vmax.f32 %v338_v25, 0.0  ;;  %v923_v28 = vpop.f32.mrb[6].mxu1 }
 0x1de   :  { %v353_v29 = vadd.f32 %v923_v28, %v691_v9  ;;  %v347_v30 = vpop.f32.mrb[7].mxu1 }
 0x1df   :  { %974 = vmatprep.mubr.f32.mxu0 %v400_v27  ;;  %v348_v31 = vadd.f32 %v691_v9, %v347_v30 }
 0x1e0   :  { %975 = vmatmul.mubr.f32.gmra.mrb[20].mxu0 %v401_v26  ;;  %v403_v32 = vmax.f32 %v353_v29, 0.0 }
 0x1e1   :  { %v402_v33 = vmax.f32 %v348_v31, 0.0  ;;  %v926_v34 = vpop.f32.mrb[8].mxu1 }
 0x1e2   :  { %v363_v35 = vadd.f32 %v926_v34, %v691_v9  ;;  %v357_v36 = vpop.f32.mrb[9].mxu1 }
 0x1e3   :  { %977 = vmatprep.mubr.f32.mxu0 %v402_v33  ;;  %v358_v37 = vadd.f32 %v691_v9, %v357_v36 }
 0x1e4   :  { %978 = vmatmul.mubr.f32.gmra.mrb[22].mxu0 %v403_v32  ;;  %v405_v38 = vmax.f32 %v363_v35, 0.0 }
 0x1e5   :  { %v404_v39 = vmax.f32 %v358_v37, 0.0  ;;  %v929_v40 = vpop.f32.mrb[10].mxu1 }
 0x1e6   :  { %v373_v41 = vadd.f32 %v929_v40, %v691_v9  ;;  %v367_v42 = vpop.f32.mrb[11].mxu1 }
 0x1e7   :  { %980 = vmatprep.mubr.f32.mxu0 %v404_v39  ;;  %v368_v43 = vadd.f32 %v691_v9, %v367_v42 }
 0x1e8   :  { %981 = vmatmul.mubr.f32.gmra.mrb[24].mxu0 %v405_v38  ;;  %v407_v44 = vmax.f32 %v373_v41, 0.0 }
 0x1e9   :  { %v406_v45 = vmax.f32 %v368_v43, 0.0  ;;  %v932_v46 = vpop.f32.mrb[12].mxu1 }
 0x1ea   :  { %v383_v47 = vadd.f32 %v932_v46, %v691_v9  ;;  %v377_v48 = vpop.f32.mrb[13].mxu1 }
 0x1eb   :  { %983 = vmatprep.mubr.f32.mxu0 %v406_v45  ;;  %v378_v49 = vadd.f32 %v691_v9, %v377_v48 }
 0x1ec   :  { %984 = vmatmul.mubr.f32.gmra.mrb[26].mxu0 %v407_v44  ;;  %v409_v50 = vmax.f32 %v383_v47, 0.0 }
 0x1ed   :  { %v408_v51 = vmax.f32 %v378_v49, 0.0  ;;  %v935_v52 = vpop.f32.mrb[14].mxu1 }
 0x1ee   :  { %v393_v53 = vadd.f32 %v935_v52, %v691_v9  ;;  %v387_v54 = vpop.f32.mrb[15].mxu1 }
 0x1ef   :  { %986 = vmatprep.mubr.f32.mxu0 %v408_v51  ;;  %v388_v55 = vadd.f32 %v691_v9, %v387_v54 }
 0x1f0   :  { %987 = vmatmul.mubr.f32.gmra.mrb[28].mxu0 %v409_v50  ;;  %v411_v56 = vmax.f32 %v393_v53, 0.0 }
 0x1f1   :  { %v410_v57 = vmax.f32 %v388_v55, 0.0 }
 0x1f3   :  { %989 = vmatprep.mubr.f32.mxu0 %v410_v57  ;;  %v605_v57 = vlaneseq }
 0x1f4   :  { %990 = vmatmul.mubr.f32.gmra.mrb[30].mxu0 %v411_v56  ;;  %v598_v56 = vld [vmem:[%s1424_s5] sm:$0x1] }
 0x1f5   :  { %v606_v59 = vshrl.u32 %v605_v57, 7 }
 0x1f7   :  { %v607_v60 = vsub.s32 0, %v606_v59 }
 0x1f9   :  { %v608_v62 = vrot.slane %v603_v61, %v607_v60 }
 0x2ab   :  { %v970_v0 = vpop.f32.mrb[16].mxu0 }
 0x2ac   :  { %v509_v1 = vadd.f32 %v970_v0, %v709_v63  ;;  %v503_v2 = vpop.f32.mrb[17].mxu0 }
 0x2ad   :  { %v504_v3 = vadd.f32 %v709_v63, %v503_v2 }
 0x2ae   :  { %v583_v4 = vmax.f32 %v509_v1, 0.0 }
 0x2af   :  { %v582_v5 = vmax.f32 %v504_v3, 0.0  ;;  %v973_v6 = vpop.f32.mrb[18].mxu0 }
 0x2b0   :  { %v519_v7 = vadd.f32 %v973_v6, %v709_v63  ;;  %v513_v8 = vpop.f32.mrb[19].mxu0 }
 0x2b1   :  { %v1124_v9 = vpack.c.bf16 %v583_v4, %v582_v5  ;;  %v514_v10 = vadd.f32 %v709_v63, %v513_v8 }
 0x2b2   :  { %v585_v11 = vmax.f32 %v519_v7, 0.0 }
 0x2b3   :  { %v584_v12 = vmax.f32 %v514_v10, 0.0  ;;  %1125 = vmatpush3.bf16.xpose.msra.mxu1 %v1124_v9  ;;  %v976_v13 = vpop.f32.mrb[20].mxu0 }
 0x2b4   :  { %v529_v14 = vadd.f32 %v976_v13, %v709_v63  ;;  %v523_v15 = vpop.f32.mrb[21].mxu0  ;;  %1126 = vmatprep.subr.bf16.mxu1 %v1156_v58 }
 0x2b5   :  { %v1127_v16 = vpack.c.bf16 %v585_v11, %v584_v12  ;;  %v524_v17 = vadd.f32 %v709_v63, %v523_v15 }
 0x2b6   :  { %v587_v18 = vmax.f32 %v529_v14, 0.0 }
 0x2b7   :  { %v586_v19 = vmax.f32 %v524_v17, 0.0  ;;  %v979_v20 = vpop.f32.mrb[22].mxu0 }
 0x2b8   :  { %v539_v21 = vadd.f32 %v979_v20, %v709_v63  ;;  %v533_v22 = vpop.f32.mrb[23].mxu0 }
 0x2b9   :  { %v1130_v23 = vpack.c.bf16 %v587_v18, %v586_v19  ;;  %v534_v24 = vadd.f32 %v709_v63, %v533_v22 }
 0x2ba   :  { %v589_v25 = vmax.f32 %v539_v21, 0.0 }
 0x2bb   :  { %1128 = vmatpush3.bf16.xpose.msra.mxu1 %v1127_v16  ;;  %v588_v26 = vmax.f32 %v534_v24, 0.0  ;;  %v982_v27 = vpop.f32.mrb[24].mxu0 }
 0x2bc   :  { %1129 = vmatprep.subr.bf16.mxu1 %v1156_v58  ;;  %v549_v28 = vadd.f32 %v982_v27, %v709_v63  ;;  %v543_v29 = vpop.f32.mrb[25].mxu0 }
 0x2bd   :  { %v1133_v30 = vpack.c.bf16 %v589_v25, %v588_v26  ;;  %v544_v31 = vadd.f32 %v709_v63, %v543_v29 }
 0x2be   :  { %v591_v32 = vmax.f32 %v549_v28, 0.0 }
 0x2bf   :  { %v590_v33 = vmax.f32 %v544_v31, 0.0  ;;  %v985_v34 = vpop.f32.mrb[26].mxu0 }
 0x2c0   :  { %v559_v35 = vadd.f32 %v985_v34, %v709_v63  ;;  %v553_v36 = vpop.f32.mrb[27].mxu0 }
 0x2c1   :  { %v1136_v37 = vpack.c.bf16 %v591_v32, %v590_v33  ;;  %v554_v38 = vadd.f32 %v709_v63, %v553_v36 }
 0x2c2   :  { %v593_v39 = vmax.f32 %v559_v35, 0.0 }
 0x2c3   :  { %1131 = vmatpush3.bf16.xpose.msra.mxu1 %v1130_v23  ;;  %v592_v40 = vmax.f32 %v554_v38, 0.0  ;;  %v988_v41 = vpop.f32.mrb[28].mxu0 }
 0x2c4   :  { %1132 = vmatprep.subr.bf16.mxu1 %v1156_v58  ;;  %v569_v42 = vadd.f32 %v988_v41, %v709_v63  ;;  %v563_v43 = vpop.f32.mrb[29].mxu0 }
 0x2c5   :  { %v1139_v44 = vpack.c.bf16 %v593_v39, %v592_v40  ;;  %v564_v45 = vadd.f32 %v709_v63, %v563_v43 }
 0x2c6   :  { %v595_v46 = vmax.f32 %v569_v42, 0.0 }
 0x2c7   :  { %v594_v47 = vmax.f32 %v564_v45, 0.0  ;;  %v991_v48 = vpop.f32.mrb[30].mxu0 }
 0x2c8   :  { %v579_v49 = vadd.f32 %v991_v48, %v709_v63  ;;  %v573_v50 = vpop.f32.mrb[31].mxu0 }
 0x2c9   :  { %v1142_v51 = vpack.c.bf16 %v595_v46, %v594_v47  ;;  %v574_v52 = vadd.f32 %v709_v63, %v573_v50 }
 0x2ca   :  { %v597_v53 = vmax.f32 %v579_v49, 0.0 }
 0x2cb   :  { %1134 = vmatpush3.bf16.xpose.msra.mxu1 %v1133_v30  ;;  %v596_v54 = vmax.f32 %v574_v52, 0.0 }
 0x2cc   :  { %1135 = vmatprep.subr.bf16.mxu1 %v1156_v58 }
 0x2cd   :  { %v1145_v55 = vpack.c.bf16 %v597_v53, %v596_v54 }
 0x2d3   :  { %1137 = vmatpush3.bf16.xpose.msra.mxu1 %v1136_v37 }
 0x2d4   :  { %1138 = vmatprep.subr.bf16.mxu1 %v1156_v58 }
 0x2db   :  { %1140 = vmatpush3.bf16.xpose.msra.mxu1 %v1139_v44 }
 0x2dc   :  { %1141 = vmatprep.subr.bf16.mxu1 %v1156_v58 }
 0x2e3   :  { %1143 = vmatpush3.bf16.xpose.msra.mxu1 %v1142_v51 }
 0x2e4   :  { %1144 = vmatprep.subr.bf16.mxu1 %v1156_v58 }
 0x2eb   :  { %1146 = vmatpush3.bf16.xpose.msra.mxu1 %v1145_v55 }
 0x2f2   :  { %1025 = vmatmul.mubr.f32.vlgmr.msra.gmra.mrb[16].mxu1 %v598_v56 }
 0x3c5   :  { %v675_v63 = vpop.f32.mrb[16].mxu1 }
 0x3c6   :  { %v676_v0 = vadd.f32 %v675_v63, %v608_v62  ;;  %v1026_v1 = vpop.f32.mrb[17].mxu1 }
 0x3c8   :  { %v710_v2 = vmul.f32 -1.442695, %v676_v0 }
 0x3ca   :  { %1152 = vpow2.f32 %v710_v2 }
 0x3d4   :  { %v1153_v3 = vpop.eup %1152 }
 0x3d5   :  { %v682_v4 = vadd.f32 1.0, %v1153_v3 }
 0x3d7   :  { %1154 = vrcp.f32 %v682_v4 }
 0x3e1   :  { %v1155_v58 = vpop.eup %1154 }
 0x3e2   :  { %685 = vst [vmem:[%s1425_s7] sm:$0x1] %v1155_v58 }

// kernel: vgan_discriminator_forward.1
= control target key start
LH: loop header
LB: loop body
LE: loop exit
PB: predicated region body
PF: predicated region fallthrough
CT: control target
= control target key end

     0   :  { %vm1157_vm0 = vmmov 0   ;;  %s1418_s1 = inlined_call_operand.vmem [shape: f32[128,128], index: 1, kind: input, shape index: {}]   ;;  %s1419_s0 = inlined_call_operand.vmem [shape: f32[128,128], index: 0, kind: input, shape index: {}]   ;;  %s1420_s3 = inlined_call_operand.vmem [shape: f32[2,128,128], index: 3, kind: input, shape index: {}]   ;;  %s1421_s2 = inlined_call_operand.vmem [shape: f32[1,128], index: 2, kind: input, shape index: {}]   ;;  %s1422_s4 = inlined_call_operand.vmem [shape: f32[2,1,128], index: 4, kind: input, shape index: {}]   ;;  %s1423_s6 = inlined_call_operand.<no memory space> [shape: f32[1,1], index: 6, kind: input, shape index: {}]   ;;  %s1424_s5 = inlined_call_operand.vmem [shape: f32[1,128], index: 5, kind: input, shape index: {}]   ;;  %s1425_s7 = inlined_call_operand.vmem [shape: f32[1,1,128], index: 7, kind: output, shape index: {}]  }
   0x1   :  { %v44_v0 = vld [vmem:[%s1418_s1] sm:$0xff]  ;;  %v45_v1 = vld [vmem:[%s1418_s1 + $0x8] sm:$0xff]  ;;  %v46_v2 = vld [vmem:[%s1418_s1 + $0x10] sm:$0xff] }
   0x2   :  { %v1027_v3 = vpack.c.bf16 %v45_v1, %v44_v0  ;;  %v47_v4 = vld [vmem:[%s1418_s1 + $0x18] sm:$0xff]  ;;  %v48_v6 = vld [vmem:[%s1418_s1 + $0x20] sm:$0xff]  ;;  %v49_v7 = vld [vmem:[%s1418_s1 + $0x28] sm:$0xff] }
   0x3   :  { %v1031_v5 = vpack.c.bf16 %v47_v4, %v46_v2  ;;  %v1035_v8 = vpack.c.bf16 %v49_v7, %v48_v6  ;;  %v28_v9 = vld [vmem:[%s1419_s0] sm:$0xff]  ;;  %v50_v10 = vld [vmem:[%s1418_s1 + $0x30] sm:$0xff]  ;;  %v51_v11 = vld [vmem:[%s1418_s1 + $0x38] sm:$0xff] }
   0x4   :  { %1028 = vmatprep.subr.bf16.mxu0 %v1027_v3  ;;  %856 = vmatprep.mubr.f32.mxu0 %v28_v9  ;;  %v1039_v12 = vpack.c.bf16 %v51_v11, %v50_v10  ;;  %v52_v13 = vld [vmem:[%s1418_s1 + $0x40] sm:$0xff]  ;;  %v53_v14 = vld [vmem:[%s1418_s1 + $0x48] sm:$0xff]  ;;  %v230_v17 = vld [vmem:[%s1420_s3 + $0x10] sm:$0xff] }
   0x5   :  { %1030 = vmatpush3.bf16.msra.mxu0 %v1027_v3  ;;  %v228_v15 = vld [vmem:[%s1420_s3] sm:$0xff]  ;;  %v229_v16 = vld [vmem:[%s1420_s3 + $0x8] sm:$0xff]  ;;  %v231_v18 = vld [vmem:[%s1420_s3 + $0x18] sm:$0xff]  ;;  %v1043_v21 = vpack.c.bf16 %v53_v14, %v52_v13 }
   0x6   :  { %1032 = vmatprep.subr.bf16.mxu0 %v1031_v5  ;;  %v1059_v19 = vpack.c.bf16 %v229_v16, %v228_v15  ;;  %v1063_v20 = vpack.c.bf16 %v231_v18, %v230_v17  ;;  %v232_v22 = vld [vmem:[%s1420_s3 + $0x20] sm:$0xff]  ;;  %v233_v23 = vld [vmem:[%s1420_s3 + $0x28] sm:$0xff]  ;;  %v54_v24 = vld [vmem:[%s1418_s1 + $0x50] sm:$0xff] }
   0x7   :  { %v55_v25 = vld [vmem:[%s1418_s1 + $0x58] sm:$0xff]  ;;  %v1067_v26 = vpack.c.bf16 %v233_v23, %v232_v22  ;;  %v234_v28 = vld [vmem:[%s1420_s3 + $0x30] sm:$0xff]  ;;  %v56_v30 = vld [vmem:[%s1418_s1 + $0x60] sm:$0xff] }
   0x8   :  { %1060 = vmatprep.subr.bf16.mxu1 %v1059_v19  ;;  %v1047_v27 = vpack.c.bf16 %v55_v25, %v54_v24  ;;  %v235_v29 = vld [vmem:[%s1420_s3 + $0x38] sm:$0xff]  ;;  %v57_v31 = vld [vmem:[%s1418_s1 + $0x68] sm:$0xff]  ;;  %v236_v34 = vld [vmem:[%s1420_s3 + $0x40] sm:$0xff] }
   0x9   :  { %1034 = vmatpush3.bf16.msra.mxu0 %v1031_v5  ;;  %1062 = vmatpush3.bf16.msra.mxu1 %v1059_v19  ;;  %v1071_v32 = vpack.c.bf16 %v235_v29, %v234_v28  ;;  %v1051_v33 = vpack.c.bf16 %v57_v31, %v56_v30  ;;  %v237_v35 = vld [vmem:[%s1420_s3 + $0x48] sm:$0xff]  ;;  %v58_v36 = vld [vmem:[%s1418_s1 + $0x70] sm:$0xff]  ;;  %v59_v37 = vld [vmem:[%s1418_s1 + $0x78] sm:$0xff] }
   0xa   :  { %1036 = vmatprep.subr.bf16.mxu0 %v1035_v8  ;;  %1064 = vmatprep.subr.bf16.mxu1 %v1063_v20  ;;  %v1075_v38 = vpack.c.bf16 %v237_v35, %v236_v34  ;;  %v1055_v39 = vpack.c.bf16 %v59_v37, %v58_v36  ;;  %v238_v40 = vld [vmem:[%s1420_s3 + $0x50] sm:$0xff]  ;;  %v239_v41 = vld [vmem:[%s1420_s3 + $0x58] sm:$0xff]  ;;  %v240_v43 = vld [vmem:[%s1420_s3 + $0x60] sm:$0xff] }
   0xb   :  { %v1079_v42 = vpack.c.bf16 %v239_v41, %v238_v40  ;;  %v241_v44 = vld [vmem:[%s1420_s3 + $0x68] sm:$0xff]  ;;  %v30_v47 = vld [vmem:[%s1419_s0 + $0x10] sm:$0xff]  ;;  %v31_v48 = vld [vmem:[%s1419_s0 + $0x18] sm:$0xff] }
   0xc   :  { %v29_v45 = vld [vmem:[%s1419_s0 + $0x8] sm:$0xff]  ;;  %v1083_v46 = vpack.c.bf16 %v241_v44, %v240_v43  ;;  %v32_v49 = vld [vmem:[%s1419_s0 + $0x20] sm:$0xff]  ;;  %v34_v51 = vld [vmem:[%s1419_s0 + $0x30] sm:$0xff] }
   0xd   :  { %1038 = vmatpush3.bf16.msra.mxu0 %v1035_v8  ;;  %1066 = vmatpush3.bf16.msra.mxu1 %v1063_v20  ;;  %v33_v50 = vld [vmem:[%s1419_s0 + $0x28] sm:$0xff]  ;;  %v35_v52 = vld [vmem:[%s1419_s0 + $0x38] sm:$0xff]  ;;  %v36_v53 = vld [vmem:[%s1419_s0 + $0x40] sm:$0xff] }
   0xe   :  { %1040 = vmatprep.subr.bf16.mxu0 %v1039_v12  ;;  %1068 = vmatprep.subr.bf16.mxu1 %v1067_v26  ;;  %v37_v54 = vld [vmem:[%s1419_s0 + $0x48] sm:$0xff]  ;;  %v38_v55 = vld [vmem:[%s1419_s0 + $0x50] sm:$0xff]  ;;  %v39_v56 = vld [vmem:[%s1419_s0 + $0x58] sm:$0xff] }
   0xf   :  { %v40_v57 = vld [vmem:[%s1419_s0 + $0x60] sm:$0xff]  ;;  %v41_v58 = vld [vmem:[%s1419_s0 + $0x68] sm:$0xff]  ;;  %v42_v59 = vld [vmem:[%s1419_s0 + $0x70] sm:$0xff] }
  0x10   :  { %v43_v60 = vld [vmem:[%s1419_s0 + $0x78] sm:$0xff]  ;;  %v242_v61 = vld [vmem:[%s1420_s3 + $0x70] sm:$0xff]  ;;  %v692_v0 = vld [vmem:[%s1420_s3 + $0x80] sm:$0xff] }
  0x11   :  { %1042 = vmatpush3.bf16.msra.mxu0 %v1039_v12  ;;  %1070 = vmatpush3.bf16.msra.mxu1 %v1067_v26  ;;  %v243_v62 = vld [vmem:[%s1420_s3 + $0x78] sm:$0xff]  ;;  %v693_v1 = vld [vmem:[%s1420_s3 + $0x88] sm:$0xff]  ;;  %v694_v2 = vld [vmem:[%s1420_s3 + $0x90] sm:$0xff] }
  0x12   :  { %1044 = vmatprep.subr.bf16.mxu0 %v1043_v21  ;;  %1072 = vmatprep.subr.bf16.mxu1 %v1071_v32  ;;  %v1087_v63 = vpack.c.bf16 %v243_v62, %v242_v61  ;;  %v1091_v3 = vpack.c.bf16 %v693_v1, %v692_v0  ;;  %v695_v4 = vld [vmem:[%s1420_s3 + $0x98] sm:$0xff]  ;;  %v696_v6 = vld [vmem:[%s1420_s3 + $0xa0] sm:$0xff]  ;;  %v697_v7 = vld [vmem:[%s1420_s3 + $0xa8] sm:$0xff] }
  0x13   :  { %v1095_v5 = vpack.c.bf16 %v695_v4, %v694_v2  ;;  %v1099_v8 = vpack.c.bf16 %v697_v7, %v696_v6  ;;  %v698_v9 = vld [vmem:[%s1420_s3 + $0xb0] sm:$0xff]  ;;  %v699_v10 = vld [vmem:[%s1420_s3 + $0xb8] sm:$0xff]  ;;  %v700_v12 = vld [vmem:[%s1420_s3 + $0xc0] sm:$0xff] }
  0x14   :  { %v1103_v11 = vpack.c.bf16 %v699_v10, %v698_v9  ;;  %v701_v13 = vld [vmem:[%s1420_s3 + $0xc8] sm:$0xff]  ;;  %v702_v15 = vld [vmem:[%s1420_s3 + $0xd0] sm:$0xff]  ;;  %v703_v16 = vld [vmem:[%s1420_s3 + $0xd8] sm:$0xff] }
  0x15   :  { %1046 = vmatpush3.bf16.msra.mxu0 %v1043_v21  ;;  %1074 = vmatpush3.bf16.msra.mxu1 %v1071_v32  ;;  %v1107_v14 = vpack.c.bf16 %v701_v13, %v700_v12  ;;  %v1111_v17 = vpack.c.bf16 %v703_v16, %v702_v15  ;;  %v704_v18 = vld [vmem:[%s1420_s3 + $0xe0] sm:$0xff]  ;;  %v705_v19 = vld [vmem:[%s1420_s3 + $0xe8] sm:$0xff]  ;;  %v706_v6 = vld [vmem:[%s1420_s3 + $0xf0] sm:$0xff] }
  0x16   :  { %1048 = vmatprep.subr.bf16.mxu0 %v1047_v27  ;;  %1076 = vmatprep.subr.bf16.mxu1 %v1075_v38  ;;  %v1115_v20 = vpack.c.bf16 %v705_v19, %v704_v18  ;;  %v690_v21 = vld [vmem:[%s1421_s2] ss:$0 sm:$0xff]  ;;  %v707_v7 = vld [vmem:[%s1420_s3 + $0xf8] sm:$0xff] }
  0x17   :  { %v691_v9 = vld [vmem:[%s1422_s4] ss:$0 sm:$0xff] }
  0x19   :  { %1050 = vmatpush3.bf16.msra.mxu0 %v1047_v27  ;;  %1078 = vmatpush3.bf16.msra.mxu1 %v1075_v38 }
  0x1a   :  { %1052 = vmatprep.subr.bf16.mxu0 %v1051_v33  ;;  %1080 = vmatprep.subr.bf16.mxu1 %v1079_v42 }
  0x1d   :  { %1054 = vmatpush3.bf16.msra.mxu0 %v1051_v33  ;;  %1082 = vmatpush3.bf16.msra.mxu1 %v1079_v42 }
  0x1e   :  { %1056 = vmatprep.subr.bf16.mxu0 %v1055_v39  ;;  %1084 = vmatprep.subr.bf16.mxu1 %v1083_v46 }
  0x21   :  { %1058 = vmatpush3.bf16.msra.mxu0 %v1055_v39  ;;  %1086 = vmatpush3.bf16.msra.mxu1 %v1083_v46 }
  0x22   :  { %1088 = vmatprep.subr.bf16.mxu1 %v1087_v63  ;;  %1092 = vmatprep.subr.bf16.mxu0 %v1091_v3 }
  0x24   :  { %857 = vmatmul.mubr.f32.vlgmr.msra.gmra.mrb[0].mxu0 %v29_v45 }
  0x25   :  { %859 = vmatprep.mubr.f32.mxu0 %v30_v47  ;;  %1090 = vmatpush3.bf16.msra.mxu1 %v1087_v63 }
  0x26   :  { %1094 = vmatpush3.bf16.msra.mxu0 %v1091_v3 }
  0x27   :  { %1096 = vmatprep.subr.bf16.mxu0 %v1095_v5 }
  0x28   :  { %860 = vmatmul.mubr.f32.gmra.mrb[2].mxu0 %v31_v48 }
  0x29   :  { %862 = vmatprep.mubr.f32.mxu0 %v32_v49 }
  0x2a   :  { %1098 = vmatpush3.bf16.msra.mxu0 %v1095_v5 }
  0x2b   :  { %1100 = vmatprep.subr.bf16.mxu0 %v1099_v8 }
  0x2c   :  { %863 = vmatmul.mubr.f32.gmra.mrb[4].mxu0 %v33_v50 }
  0x2d   :  { %865 = vmatprep.mubr.f32.mxu0 %v34_v51 }
  0x2e   :  { %1102 = vmatpush3.bf16.msra.mxu0 %v1099_v8  ;;  %v1119_v8 = vpack.c.bf16 %v707_v7, %v706_v6 }
  0x2f   :  { %1104 = vmatprep.subr.bf16.mxu0 %v1103_v11 }
  0x30   :  { %866 = vmatmul.mubr.f32.gmra.mrb[6].mxu0 %v35_v52 }
  0x31   :  { %868 = vmatprep.mubr.f32.mxu0 %v36_v53 }
  0x32   :  { %1106 = vmatpush3.bf16.msra.mxu0 %v1103_v11 }
  0x33   :  { %1108 = vmatprep.subr.bf16.mxu0 %v1107_v14 }
  0x34   :  { %869 = vmatmul.mubr.f32.gmra.mrb[8].mxu0 %v37_v54 }
  0x35   :  { %871 = vmatprep.mubr.f32.mxu0 %v38_v55 }
  0x36   :  { %1110 = vmatpush3.bf16.msra.mxu0 %v1107_v14 }
  0x37   :  { %1112 = vmatprep.subr.bf16.mxu0 %v1111_v17 }
  0x38   :  { %872 = vmatmul.mubr.f32.gmra.mrb[10].mxu0 %v39_v56 }
  0x39   :  { %874 = vmatprep.mubr.f32.mxu0 %v40_v57 }
  0x3a   :  { %1114 = vmatpush3.bf16.msra.mxu0 %v1111_v17 }
  0x3b   :  { %1116 = vmatprep.subr.bf16.mxu0 %v1115_v20 }
  0x3c   :  { %875 = vmatmul.mubr.f32.gmra.mrb[12].mxu0 %v41_v58 }
  0x3d   :  { %877 = vmatprep.mubr.f32.mxu0 %v42_v59 }
  0x3e   :  { %1118 = vmatpush3.bf16.msra.mxu0 %v1115_v20 }
  0x3f   :  { %1120 = vmatprep.subr.bf16.mxu0 %v1119_v8 }
  0x40   :  { %878 = vmatmul.mubr.f32.gmra.mrb[14].mxu0 %v43_v60 }
  0x42   :  { %1122 = vmatpush3.bf16.msra.mxu0 %v1119_v8 }
  0xf7   :  { %v858_v22 = vpop.f32.mrb[0].mxu0 }
  0xf8   :  { %v139_v23 = vadd.f32 %v858_v22, %v690_v21  ;;  %v133_v24 = vpop.f32.mrb[1].mxu0 }
  0xf9   :  { %v134_v25 = vadd.f32 %v690_v21, %v133_v24 }
  0xfa   :  { %v213_v28 = vmax.f32 %v139_v23, 0.0 }
  0xfb   :  { %v861_v26 = vpop.f32.mrb[2].mxu0  ;;  %v212_v27 = vmax.f32 %v134_v25, 0.0 }
  0xfc   :  { %v149_v29 = vadd.f32 %v861_v26, %v690_v21  ;;  %v143_v30 = vpop.f32.mrb[3].mxu0 }
  0xfd   :  { %v144_v31 = vadd.f32 %v690_v21, %v143_v30  ;;  %912 = vmatprep.mubr.f32.mxu1 %v212_v27 }
  0xfe   :  { %v215_v32 = vmax.f32 %v149_v29, 0.0  ;;  %913 = vmatmul.mubr.f32.vlgmr.msra.gmra.mrb[0].mxu1 %v213_v28 }
  0xff   :  { %v214_v33 = vmax.f32 %v144_v31, 0.0  ;;  %v864_v34 = vpop.f32.mrb[4].mxu0 }
 0x100   :  { %v159_v35 = vadd.f32 %v864_v34, %v690_v21  ;;  %v153_v36 = vpop.f32.mrb[5].mxu0 }
 0x101   :  { %915 = vmatprep.mubr.f32.mxu1 %v214_v33  ;;  %v154_v37 = vadd.f32 %v690_v21, %v153_v36 }
 0x102   :  { %v217_v38 = vmax.f32 %v159_v35, 0.0  ;;  %916 = vmatmul.mubr.f32.gmra.mrb[2].mxu1 %v215_v32 }
 0x103   :  { %v216_v39 = vmax.f32 %v154_v37, 0.0  ;;  %v867_v40 = vpop.f32.mrb[6].mxu0 }
 0x104   :  { %v169_v41 = vadd.f32 %v867_v40, %v690_v21  ;;  %v163_v42 = vpop.f32.mrb[7].mxu0 }
 0x105   :  { %918 = vmatprep.mubr.f32.mxu1 %v216_v39  ;;  %v164_v43 = vadd.f32 %v690_v21, %v163_v42 }
 0x106   :  { %919 = vmatmul.mubr.f32.gmra.mrb[4].mxu1 %v217_v38  ;;  %v219_v44 = vmax.f32 %v169_v41, 0.0 }
 0x107   :  { %v218_v45 = vmax.f32 %v164_v43, 0.0  ;;  %v870_v46 = vpop.f32.mrb[8].mxu0 }
 0x108   :  { %v179_v47 = vadd.f32 %v870_v46, %v690_v21  ;;  %v173_v48 = vpop.f32.mrb[9].mxu0 }
 0x109   :  { %921 = vmatprep.mubr.f32.mxu1 %v218_v45  ;;  %v174_v49 = vadd.f32 %v690_v21, %v173_v48 }
 0x10a   :  { %922 = vmatmul.mubr.f32.gmra.mrb[6].mxu1 %v219_v44  ;;  %v221_v50 = vmax.f32 %v179_v47, 0.0 }
 0x10b   :  { %v220_v51 = vmax.f32 %v174_v49, 0.0  ;;  %v873_v52 = vpop.f32.mrb[10].mxu0 }
 0x10c   :  { %v189_v53 = vadd.f32 %v873_v52, %v690_v21  ;;  %v183_v54 = vpop.f32.mrb[11].mxu0 }
 0x10d   :  { %924 = vmatprep.mubr.f32.mxu1 %v220_v51  ;;  %v184_v55 = vadd.f32 %v690_v21, %v183_v54 }
 0x10e   :  { %925 = vmatmul.mubr.f32.gmra.mrb[8].mxu1 %v221_v50  ;;  %v223_v56 = vmax.f32 %v189_v53, 0.0 }
 0x10f   :  { %v222_v57 = vmax.f32 %v184_v55, 0.0  ;;  %v876_v58 = vpop.f32.mrb[12].mxu0 }
 0x110   :  { %v199_v59 = vadd.f32 %v876_v58, %v690_v21  ;;  %v193_v60 = vpop.f32.mrb[13].mxu0  ;;  %v1156_v58 = vmov 0.0|0.0  }
 0x111   :  { %927 = vmatprep.mubr.f32.mxu1 %v222_v57  ;;  %v194_v61 = vadd.f32 %v690_v21, %v193_v60  ;;  %1123 = vmatprep.subr.bf16.mxu1 %v1156_v58  ;;  %v1159_v60 = vmov 0  }
 0x112   :  { %928 = vmatmul.mubr.f32.gmra.mrb[10].mxu1 %v223_v56  ;;  %v225_v62 = vmax.f32 %v199_v59, 0.0  ;;  %v1158_v59 = vmov 0.0   ;;  %1151 = vset.pattern.permute.xlu0 %v1159_v60 }
 0x113   :  { %v224_v63 = vmax.f32 %v194_v61, 0.0  ;;  %v879_v0 = vpop.f32.mrb[14].mxu0  ;;  %v12_v61 = vstv %s1423_s6 }
 0x114   :  { %v209_v1 = vadd.f32 %v879_v0, %v690_v21  ;;  %v203_v2 = vpop.f32.mrb[15].mxu0  ;;  %13 = vst [vmem:[#allocation2] sm:$0x1] %v12_v61 }
 0x115   :  { %930 = vmatprep.mubr.f32.mxu1 %v224_v63  ;;  %v204_v3 = vadd.f32 %v690_v21, %v203_v2  ;;  %v709_v63 = vld [vmem:[%s1422_s4 + $0x1] ss:$0 sm:$0xff] }
 0x116   :  { %931 = vmatmul.mubr.f32.gmra.mrb[12].mxu1 %v225_v62  ;;  %v227_v4 = vmax.f32 %v209_v1, 0.0 }
 0x117   :  { %v226_v5 = vmax.f32 %v204_v3, 0.0 }
 0x119   :  { %933 = vmatprep.mubr.f32.mxu1 %v226_v5 }
 0x11a   :  { %934 = vmatmul.mubr.f32.gmra.mrb[14].mxu1 %v227_v4 }
 0x11b   :  { %1024 = vmatprep.mubr.msk.f32.mxu1 %vm1157_vm0, %v1158_v59  ;;  %v599_v62 = vld [vmem:[#allocation2] sm:$0x1] }
 0x11c   :  { %602 = vperm.xlu0 %1151, %v599_v62  }
 0x19b   :  { %v603_v61 = vpop.permute.xlu0 %602 }
 0x1d1   :  { %v914_v10 = vpop.f32.mrb[0].mxu1 }
 0x1d2   :  { %v323_v11 = vadd.f32 %v914_v10, %v691_v9  ;;  %v317_v12 = vpop.f32.mrb[1].mxu1 }
 0x1d3   :  { %v318_v13 = vadd.f32 %v691_v9, %v317_v12 }
 0x1d4   :  { %v397_v16 = vmax.f32 %v323_v11, 0.0 }
 0x1d5   :  { %v396_v14 = vmax.f32 %v318_v13, 0.0  ;;  %v917_v15 = vpop.f32.mrb[2].mxu1 }
 0x1d6   :  { %v333_v17 = vadd.f32 %v917_v15, %v691_v9  ;;  %v327_v18 = vpop.f32.mrb[3].mxu1 }
 0x1d7   :  { %v328_v19 = vadd.f32 %v691_v9, %v327_v18  ;;  %968 = vmatprep.mubr.f32.mxu0 %v396_v14 }
 0x1d8   :  { %v399_v20 = vmax.f32 %v333_v17, 0.0  ;;  %969 = vmatmul.mubr.f32.vlgmr.msra.gmra.mrb[16].mxu0 %v397_v16 }
 0x1d9   :  { %v398_v21 = vmax.f32 %v328_v19, 0.0  ;;  %v920_v22 = vpop.f32.mrb[4].mxu1 }
 0x1da   :  { %v343_v23 = vadd.f32 %v920_v22, %v691_v9  ;;  %v337_v24 = vpop.f32.mrb[5].mxu1 }
 0x1db   :  { %971 = vmatprep.mubr.f32.mxu0 %v398_v21  ;;  %v338_v25 = vadd.f32 %v691_v9, %v337_v24 }
 0x1dc   :  { %v401_v26 = vmax.f32 %v343_v23, 0.0  ;;  %972 = vmatmul.mubr.f32.gmra.mrb[18].mxu0 %v399_v20 }
 0x1dd   :  { %v400_v27 = vmax.f32 %v338_v25, 0.0  ;;  %v923_v28 = vpop.f32.mrb[6].mxu1 }
 0x1de   :  { %v353_v29 = vadd.f32 %v923_v28, %v691_v9  ;;  %v347_v30 = vpop.f32.mrb[7].mxu1 }
 0x1df   :  { %974 = vmatprep.mubr.f32.mxu0 %v400_v27  ;;  %v348_v31 = vadd.f32 %v691_v9, %v347_v30 }
 0x1e0   :  { %975 = vmatmul.mubr.f32.gmra.mrb[20].mxu0 %v401_v26  ;;  %v403_v32 = vmax.f32 %v353_v29, 0.0 }
 0x1e1   :  { %v402_v33 = vmax.f32 %v348_v31, 0.0  ;;  %v926_v34 = vpop.f32.mrb[8].mxu1 }
 0x1e2   :  { %v363_v35 = vadd.f32 %v926_v34, %v691_v9  ;;  %v357_v36 = vpop.f32.mrb[9].mxu1 }
 0x1e3   :  { %977 = vmatprep.mubr.f32.mxu0 %v402_v33  ;;  %v358_v37 = vadd.f32 %v691_v9, %v357_v36 }
 0x1e4   :  { %978 = vmatmul.mubr.f32.gmra.mrb[22].mxu0 %v403_v32  ;;  %v405_v38 = vmax.f32 %v363_v35, 0.0 }
 0x1e5   :  { %v404_v39 = vmax.f32 %v358_v37, 0.0  ;;  %v929_v40 = vpop.f32.mrb[10].mxu1 }
 0x1e6   :  { %v373_v41 = vadd.f32 %v929_v40, %v691_v9  ;;  %v367_v42 = vpop.f32.mrb[11].mxu1 }
 0x1e7   :  { %980 = vmatprep.mubr.f32.mxu0 %v404_v39  ;;  %v368_v43 = vadd.f32 %v691_v9, %v367_v42 }
 0x1e8   :  { %981 = vmatmul.mubr.f32.gmra.mrb[24].mxu0 %v405_v38  ;;  %v407_v44 = vmax.f32 %v373_v41, 0.0 }
 0x1e9   :  { %v406_v45 = vmax.f32 %v368_v43, 0.0  ;;  %v932_v46 = vpop.f32.mrb[12].mxu1 }
 0x1ea   :  { %v383_v47 = vadd.f32 %v932_v46, %v691_v9  ;;  %v377_v48 = vpop.f32.mrb[13].mxu1 }
 0x1eb   :  { %983 = vmatprep.mubr.f32.mxu0 %v406_v45  ;;  %v378_v49 = vadd.f32 %v691_v9, %v377_v48 }
 0x1ec   :  { %984 = vmatmul.mubr.f32.gmra.mrb[26].mxu0 %v407_v44  ;;  %v409_v50 = vmax.f32 %v383_v47, 0.0 }
 0x1ed   :  { %v408_v51 = vmax.f32 %v378_v49, 0.0  ;;  %v935_v52 = vpop.f32.mrb[14].mxu1 }
 0x1ee   :  { %v393_v53 = vadd.f32 %v935_v52, %v691_v9  ;;  %v387_v54 = vpop.f32.mrb[15].mxu1 }
 0x1ef   :  { %986 = vmatprep.mubr.f32.mxu0 %v408_v51  ;;  %v388_v55 = vadd.f32 %v691_v9, %v387_v54 }
 0x1f0   :  { %987 = vmatmul.mubr.f32.gmra.mrb[28].mxu0 %v409_v50  ;;  %v411_v56 = vmax.f32 %v393_v53, 0.0 }
 0x1f1   :  { %v410_v57 = vmax.f32 %v388_v55, 0.0 }
 0x1f3   :  { %989 = vmatprep.mubr.f32.mxu0 %v410_v57  ;;  %v605_v57 = vlaneseq }
 0x1f4   :  { %990 = vmatmul.mubr.f32.gmra.mrb[30].mxu0 %v411_v56  ;;  %v598_v56 = vld [vmem:[%s1424_s5] sm:$0x1] }
 0x1f5   :  { %v606_v59 = vshrl.u32 %v605_v57, 7 }
 0x1f7   :  { %v607_v60 = vsub.s32 0, %v606_v59 }
 0x1f9   :  { %v608_v62 = vrot.slane %v603_v61, %v607_v60 }
 0x2ab   :  { %v970_v0 = vpop.f32.mrb[16].mxu0 }
 0x2ac   :  { %v509_v1 = vadd.f32 %v970_v0, %v709_v63  ;;  %v503_v2 = vpop.f32.mrb[17].mxu0 }
 0x2ad   :  { %v504_v3 = vadd.f32 %v709_v63, %v503_v2 }
 0x2ae   :  { %v583_v4 = vmax.f32 %v509_v1, 0.0 }
 0x2af   :  { %v582_v5 = vmax.f32 %v504_v3, 0.0  ;;  %v973_v6 = vpop.f32.mrb[18].mxu0 }
 0x2b0   :  { %v519_v7 = vadd.f32 %v973_v6, %v709_v63  ;;  %v513_v8 = vpop.f32.mrb[19].mxu0 }
 0x2b1   :  { %v1124_v9 = vpack.c.bf16 %v583_v4, %v582_v5  ;;  %v514_v10 = vadd.f32 %v709_v63, %v513_v8 }
 0x2b2   :  { %v585_v11 = vmax.f32 %v519_v7, 0.0 }
 0x2b3   :  { %v584_v12 = vmax.f32 %v514_v10, 0.0  ;;  %1125 = vmatpush3.bf16.xpose.msra.mxu1 %v1124_v9  ;;  %v976_v13 = vpop.f32.mrb[20].mxu0 }
 0x2b4   :  { %v529_v14 = vadd.f32 %v976_v13, %v709_v63  ;;  %v523_v15 = vpop.f32.mrb[21].mxu0  ;;  %1126 = vmatprep.subr.bf16.mxu1 %v1156_v58 }
 0x2b5   :  { %v1127_v16 = vpack.c.bf16 %v585_v11, %v584_v12  ;;  %v524_v17 = vadd.f32 %v709_v63, %v523_v15 }
 0x2b6   :  { %v587_v18 = vmax.f32 %v529_v14, 0.0 }
 0x2b7   :  { %v586_v19 = vmax.f32 %v524_v17, 0.0  ;;  %v979_v20 = vpop.f32.mrb[22].mxu0 }
 0x2b8   :  { %v539_v21 = vadd.f32 %v979_v20, %v709_v63  ;;  %v533_v22 = vpop.f32.mrb[23].mxu0 }
 0x2b9   :  { %v1130_v23 = vpack.c.bf16 %v587_v18, %v586_v19  ;;  %v534_v24 = vadd.f32 %v709_v63, %v533_v22 }
 0x2ba   :  { %v589_v25 = vmax.f32 %v539_v21, 0.0 }
 0x2bb   :  { %1128 = vmatpush3.bf16.xpose.msra.mxu1 %v1127_v16  ;;  %v588_v26 = vmax.f32 %v534_v24, 0.0  ;;  %v982_v27 = vpop.f32.mrb[24].mxu0 }
 0x2bc   :  { %1129 = vmatprep.subr.bf16.mxu1 %v1156_v58  ;;  %v549_v28 = vadd.f32 %v982_v27, %v709_v63  ;;  %v543_v29 = vpop.f32.mrb[25].mxu0 }
 0x2bd   :  { %v1133_v30 = vpack.c.bf16 %v589_v25, %v588_v26  ;;  %v544_v31 = vadd.f32 %v709_v63, %v543_v29 }
 0x2be   :  { %v591_v32 = vmax.f32 %v549_v28, 0.0 }
 0x2bf   :  { %v590_v33 = vmax.f32 %v544_v31, 0.0  ;;  %v985_v34 = vpop.f32.mrb[26].mxu0 }
 0x2c0   :  { %v559_v35 = vadd.f32 %v985_v34, %v709_v63  ;;  %v553_v36 = vpop.f32.mrb[27].mxu0 }
 0x2c1   :  { %v1136_v37 = vpack.c.bf16 %v591_v32, %v590_v33  ;;  %v554_v38 = vadd.f32 %v709_v63, %v553_v36 }
 0x2c2   :  { %v593_v39 = vmax.f32 %v559_v35, 0.0 }
 0x2c3   :  { %1131 = vmatpush3.bf16.xpose.msra.mxu1 %v1130_v23  ;;  %v592_v40 = vmax.f32 %v554_v38, 0.0  ;;  %v988_v41 = vpop.f32.mrb[28].mxu0 }
 0x2c4   :  { %1132 = vmatprep.subr.bf16.mxu1 %v1156_v58  ;;  %v569_v42 = vadd.f32 %v988_v41, %v709_v63  ;;  %v563_v43 = vpop.f32.mrb[29].mxu0 }
 0x2c5   :  { %v1139_v44 = vpack.c.bf16 %v593_v39, %v592_v40  ;;  %v564_v45 = vadd.f32 %v709_v63, %v563_v43 }
 0x2c6   :  { %v595_v46 = vmax.f32 %v569_v42, 0.0 }
 0x2c7   :  { %v594_v47 = vmax.f32 %v564_v45, 0.0  ;;  %v991_v48 = vpop.f32.mrb[30].mxu0 }
 0x2c8   :  { %v579_v49 = vadd.f32 %v991_v48, %v709_v63  ;;  %v573_v50 = vpop.f32.mrb[31].mxu0 }
 0x2c9   :  { %v1142_v51 = vpack.c.bf16 %v595_v46, %v594_v47  ;;  %v574_v52 = vadd.f32 %v709_v63, %v573_v50 }
 0x2ca   :  { %v597_v53 = vmax.f32 %v579_v49, 0.0 }
 0x2cb   :  { %1134 = vmatpush3.bf16.xpose.msra.mxu1 %v1133_v30  ;;  %v596_v54 = vmax.f32 %v574_v52, 0.0 }
 0x2cc   :  { %1135 = vmatprep.subr.bf16.mxu1 %v1156_v58 }
 0x2cd   :  { %v1145_v55 = vpack.c.bf16 %v597_v53, %v596_v54 }
 0x2d3   :  { %1137 = vmatpush3.bf16.xpose.msra.mxu1 %v1136_v37 }
 0x2d4   :  { %1138 = vmatprep.subr.bf16.mxu1 %v1156_v58 }
 0x2db   :  { %1140 = vmatpush3.bf16.xpose.msra.mxu1 %v1139_v44 }
 0x2dc   :  { %1141 = vmatprep.subr.bf16.mxu1 %v1156_v58 }
 0x2e3   :  { %1143 = vmatpush3.bf16.xpose.msra.mxu1 %v1142_v51 }
 0x2e4   :  { %1144 = vmatprep.subr.bf16.mxu1 %v1156_v58 }
 0x2eb   :  { %1146 = vmatpush3.bf16.xpose.msra.mxu1 %v1145_v55 }
 0x2f2   :  { %1025 = vmatmul.mubr.f32.vlgmr.msra.gmra.mrb[16].mxu1 %v598_v56 }
 0x3c5   :  { %v675_v63 = vpop.f32.mrb[16].mxu1 }
 0x3c6   :  { %v676_v0 = vadd.f32 %v675_v63, %v608_v62  ;;  %v1026_v1 = vpop.f32.mrb[17].mxu1 }
 0x3c8   :  { %v710_v2 = vmul.f32 -1.442695, %v676_v0 }
 0x3ca   :  { %1152 = vpow2.f32 %v710_v2 }
 0x3d4   :  { %v1153_v3 = vpop.eup %1152 }
 0x3d5   :  { %v682_v4 = vadd.f32 1.0, %v1153_v3 }
 0x3d7   :  { %1154 = vrcp.f32 %v682_v4 }
 0x3e1   :  { %v1155_v58 = vpop.eup %1154 }
 0x3e2   :  { %685 = vst [vmem:[%s1425_s7] sm:$0x1] %v1155_v58 }

</bundles_post_ra>
